<compile_context>
chip_gen: v6e
topology: v6e:2x2x1
jax: 0.10.0
libtpu: 0.0.40
codegen_flags: <defaults>
</compile_context>

<pallas_src>
import functools

import jax
import jax.numpy as jnp
from jax.experimental import pallas as pl
from jax.experimental.pallas import tpu as pltpu


# -----------------------------------------------------------------------------
# Pallas kernel: fused depthwise(3x3) + pointwise(1x1) + LeakyReLU block
# -----------------------------------------------------------------------------
def _dwsep_block_kernel(x_ref, w_ref, b_ref, o_ref, *, stride, ho, wo,
                        negative_slope, reduce_path):
    """One batch element per grid step.

    stride == 2:
      x_ref: (1, Hp//2, 2, Wp//2, 2*Cin)   phase-pair view of padded input
      w_ref: (6, 2*Cin, Cout)              fused tap-pair weights, j = kh*2 + d
    stride == 1:
      x_ref: (1, Hp, Wp, Cin)
      w_ref: (9, Cin, Cout)  (or (9, 1, Cin) f32 when reduce_path)
    b_ref : (1, Cout) f32 effective bias
    o_ref : (1, Ho*Wo, Cout)
    """
    cout = o_ref.shape[-1]
    rows = ho * wo
    k_dim = w_ref.shape[-1] if reduce_path else w_ref.shape[1]

    def tap_contrib(j, tap):
        lhs = tap.reshape(rows, k_dim)
        if reduce_path:
            # Cout == 1: elementwise multiply (VPU) + cross-lane sum (XLU);
            # avoids a 1-column MXU matmul.
            w_row = w_ref[j].astype(jnp.float32)          # (1, K)
            return jnp.sum(lhs.astype(jnp.float32) * w_row,
                           axis=-1, keepdims=True)
        # MXU matmul, bf16 operands, f32 accumulation.
        return jnp.dot(lhs.astype(jnp.bfloat16), w_ref[j],
                       preferred_element_type=jnp.float32)

    acc = jnp.zeros((rows, cout), jnp.float32)
    if stride == 2:
        j = 0
        for kh in range(3):
            for d in range(2):      # column-pair offset; covers kw = 2d, 2d+1
                tap = x_ref[0, pl.ds(kh // 2, ho), pl.ds(kh % 2, 1),
                            pl.ds(d, wo), :]              # (ho, 1, wo, 2*Cin)
                acc = acc + tap_contrib(j, tap)
                j += 1
    else:
        j = 0
        for kh in range(3):
            for kw in range(3):
                tap = x_ref[0, pl.ds(kh, ho), pl.ds(kw, wo), :]  # (ho, wo, Cin)
                acc = acc + tap_contrib(j, tap)
                j += 1

    y = acc + b_ref[...].astype(jnp.float32)
    if negative_slope is not None:                        # LeakyReLU(0.2)
        y = jnp.where(y >= 0, y, y * negative_slope)
    o_ref[...] = y.reshape(1, rows, cout).astype(o_ref.dtype)


def dwsep_block(x_nhwc, wdw, bdw, wpw, bpw, *, stride, negative_slope):
    """One Sequential stage: depthwise 3x3 (stride, pad=1) -> 1x1 -> LeakyReLU."""
    n, h, w, cin = x_nhwc.shape
    cout = wpw.shape[1]
    ho = (h + 2 - 3) // stride + 1
    wo = (w + 2 - 3) // stride + 1

    # Fuse depthwise into pointwise:  y = sum_k tap_k @ (wdw_k * wpw) + b_eff.
    wf = wdw[:, :, None] * wpw[None, :, :]                  # (9, cin, cout)
    b_eff = (bpw + bdw @ wpw).reshape(1, cout).astype(jnp.float32)

    if stride == 2:
        hp = h + 2 + (h % 2)                                # even padded dims
        wp = w + 2 + (w % 2)
        xp = jnp.pad(x_nhwc, ((0, 0), (1, hp - h - 1), (1, wp - w - 1), (0, 0)))
        # Free reshape: split rows/cols into (pair, phase); the column phase
        # lands on the lane axis next to the channels.
        xv = xp.reshape(n, hp // 2, 2, wp // 2, 2 * cin)
        zeros = jnp.zeros_like(wf[0])
        wk = jnp.stack(
            [jnp.concatenate([wf[3 * kh], wf[3 * kh + 1]], axis=0)
             if d == 0 else
             jnp.concatenate([wf[3 * kh + 2], zeros], axis=0)
             for kh in range(3) for d in range(2)])         # (6, 2*cin, cout)
        in_block = (1, hp // 2, 2, wp // 2, 2 * cin)
        in_idx = lambda i: (i, 0, 0, 0, 0)
    else:
        hp, wp = h + 2, w + 2
        xv = jnp.pad(x_nhwc, ((0, 0), (1, 1), (1, 1), (0, 0)))
        wk = wf                                             # (9, cin, cout)
        in_block = (1, hp, wp, cin)
        in_idx = lambda i: (i, 0, 0, 0)

    reduce_path = cout == 1
    if reduce_path:
        wk = jnp.transpose(wk, (0, 2, 1)).astype(jnp.float32)  # (T, 1, K)
    else:
        wk = wk.astype(jnp.bfloat16)

    kernel = functools.partial(
        _dwsep_block_kernel, stride=stride, ho=ho, wo=wo,
        negative_slope=negative_slope, reduce_path=reduce_path)

    out = pl.pallas_call(
        kernel,
        out_shape=jax.ShapeDtypeStruct((n, ho * wo, cout), x_nhwc.dtype),
        grid=(n,),
        in_specs=[
            pl.BlockSpec(in_block, in_idx),
            pl.BlockSpec(wk.shape, lambda i: (0, 0, 0)),
            pl.BlockSpec((1, cout), lambda i: (0, 0)),
        ],
        out_specs=pl.BlockSpec((1, ho * wo, cout), lambda i: (i, 0, 0)),
        compiler_params=pltpu.CompilerParams(
            dimension_semantics=("parallel",),
            vmem_limit_bytes=48 * 1024 * 1024),
    )(xv, wk, b_eff)
    return out.reshape(n, ho, wo, cout)


# -----------------------------------------------------------------------------
# Model: parameter init + forward + pure-JAX reference
# -----------------------------------------------------------------------------
def init_params(key, in_channels=3, num_filters=16):
    """Deterministic synthetic params; shapes follow the PyTorch module."""
    nf = num_filters
    stages = [(in_channels, nf), (nf, 2 * nf), (2 * nf, 4 * nf),
              (4 * nf, 8 * nf), (8 * nf, 1)]
    params = []
    for ci, co in stages:
        key, k1, k2, k3, k4 = jax.random.split(key, 5)
        s_dw = 1.0 / 3.0                       # 1/sqrt(1*3*3)
        s_pw = float(ci) ** -0.5               # 1/sqrt(ci*1*1)
        wdw = jax.random.uniform(k1, (9, ci), jnp.float32, -s_dw, s_dw)
        bdw = jax.random.uniform(k2, (1, ci), jnp.float32, -s_dw, s_dw)
        wpw = jax.random.uniform(k3, (ci, co), jnp.float32, -s_pw, s_pw)
        bpw = jax.random.uniform(k4, (1, co), jnp.float32, -s_pw, s_pw)
        params.append((wdw, bdw, wpw, bpw))
    return params


_STRIDES = (2, 2, 2, 2, 1)
_SLOPES = (0.2, 0.2, 0.2, 0.2, None)          # final 1x1 conv has no activation


def patchgan_forward(x_nchw, params):
    x = jnp.transpose(x_nchw, (0, 2, 3, 1))   # NCHW -> NHWC
    for (wdw, bdw, wpw, bpw), s, slope in zip(params, _STRIDES, _SLOPES):
        x = dwsep_block(x, wdw, bdw, wpw, bpw, stride=s, negative_slope=slope)
    return jnp.transpose(x, (0, 3, 1, 2))     # NHWC -> NCHW


def patchgan_reference(x_nchw, params):
    """Pure-JAX reference (f32 lax convs) for correctness checking."""
    x = x_nchw
    for (wdw, bdw, wpw, bpw), s, slope in zip(params, _STRIDES, _SLOPES):
        ci, co = wpw.shape
        w_dw = wdw.reshape(3, 3, ci).transpose(2, 0, 1)[:, None, :, :]
        x = jax.lax.conv_general_dilated(
            x, w_dw, (s, s), ((1, 1), (1, 1)),
            dimension_numbers=("NCHW", "OIHW", "NCHW"),
            feature_group_count=ci)
        x = x + bdw.reshape(1, ci, 1, 1)
        w_pw = wpw.T[:, :, None, None]
        x = jax.lax.conv_general_dilated(
            x, w_pw, (1, 1), ((0, 0), (0, 0)),
            dimension_numbers=("NCHW", "OIHW", "NCHW"))
        x = x + bpw.reshape(1, co, 1, 1)
        if slope is not None:
            x = jnp.where(x >= 0, x, slope * x)
    return x


if __name__ == "__main__":
    key = jax.random.PRNGKey(0)
    key, xkey = jax.random.split(key)

    in_channels, num_filters = 3, 16          # small num_filters for the demo
    x = jax.random.normal(xkey, (2, in_channels, 16, 16), jnp.float32)  # NCHW
    params = init_params(key, in_channels, num_filters)

    fwd = jax.jit(patchgan_forward)
    out = jax.block_until_ready(fwd(x, params))

    ref = patchgan_reference(x, params)
    assert out.shape == (2, 1, 1, 1), out.shape

    # The MXU path uses bf16 operands (f32 accumulation), so compare against
    # the f32 reference with a scale-normalized tolerance.
    err = float(jnp.max(jnp.abs(out - ref)) / (jnp.max(jnp.abs(ref)) + 1e-12))
    assert err < 0.1, f"Pallas output mismatch vs JAX reference: rel_err={err}"

    print("KERNEL_OK")
</pallas_src>

<mosaic_0001>
module attributes {stable_mosaic.version = 11 : i64} {
  func.func @_dwsep_block_kernel(%arg0: i32, %arg1: memref<1x9x2x9x6xf32, #tpu.memory_space<vmem>>, %arg2: memref<6x6x16xbf16, #tpu.memory_space<vmem>>, %arg3: memref<1x16xf32, #tpu.memory_space<vmem>>, %arg4: memref<1x64x16xf32, #tpu.memory_space<vmem>>) attributes {dimension_semantics = [#tpu.dimension_semantics<parallel>], iteration_bounds = array<i64: 2>, scalar_prefetch = 0 : i64, scratch_operands = 0 : i64, tpu.core_type = #tpu.core_type<tc>, window_params = [{transform_indices = @transform_0, window_bounds = array<i64: 1, 9, 2, 9, 6>}, {pipeline_mode = #tpu.pipeline_mode<synchronous>, transform_indices = @transform_1, window_bounds = array<i64: 6, 6, 16>}, {pipeline_mode = #tpu.pipeline_mode<synchronous>, transform_indices = @transform_2, window_bounds = array<i64: 1, 16>}, {transform_indices = @transform_3, window_bounds = array<i64: 1, 64, 16>}]} {
    %cst = arith.constant 0.000000e+00 : f32
    %0 = vector.broadcast %cst : f32 to vector<64x16xf32>
    %c0 = arith.constant 0 : index
    %c0_0 = arith.constant 0 : index
    %c0_1 = arith.constant 0 : index
    %c0_2 = arith.constant 0 : index
    %c0_3 = arith.constant 0 : index
    %1 = vector.load %arg1[%c0, %c0_0, %c0_1, %c0_2, %c0_3] : memref<1x9x2x9x6xf32, #tpu.memory_space<vmem>>, vector<1x8x1x8x6xf32>
    %2 = vector.shape_cast %1 : vector<1x8x1x8x6xf32> to vector<8x1x8x6xf32>
    %3 = vector.shape_cast %2 : vector<8x1x8x6xf32> to vector<64x6xf32>
    %4 = arith.truncf %3 : vector<64x6xf32> to vector<64x6xbf16>
    %c0_4 = arith.constant 0 : index
    %c0_5 = arith.constant 0 : index
    %c0_6 = arith.constant 0 : index
    %5 = vector.load %arg2[%c0_4, %c0_5, %c0_6] : memref<6x6x16xbf16, #tpu.memory_space<vmem>>, vector<1x6x16xbf16>
    %6 = vector.shape_cast %5 : vector<1x6x16xbf16> to vector<6x16xbf16>
    %cst_7 = arith.constant dense<0.000000e+00> : vector<64x16xf32>
    %7 = tpu.matmul %4, %6, %cst_7 {dimension_numbers = #tpu.dot_dimension_numbers<[1], [0], [0], [1], [0, 0, 1, 1], [], []>} : vector<64x6xbf16>, vector<6x16xbf16>, vector<64x16xf32> -> vector<64x16xf32>
    %8 = arith.addf %0, %7 : vector<64x16xf32>
    %c0_8 = arith.constant 0 : index
    %c0_9 = arith.constant 0 : index
    %c0_10 = arith.constant 0 : index
    %c1 = arith.constant 1 : index
    %c0_11 = arith.constant 0 : index
    %9 = vector.load %arg1[%c0_8, %c0_9, %c0_10, %c1, %c0_11] : memref<1x9x2x9x6xf32, #tpu.memory_space<vmem>>, vector<1x8x1x8x6xf32>
    %10 = vector.shape_cast %9 : vector<1x8x1x8x6xf32> to vector<8x1x8x6xf32>
    %11 = vector.shape_cast %10 : vector<8x1x8x6xf32> to vector<64x6xf32>
    %12 = arith.truncf %11 : vector<64x6xf32> to vector<64x6xbf16>
    %c1_12 = arith.constant 1 : index
    %c0_13 = arith.constant 0 : index
    %c0_14 = arith.constant 0 : index
    %13 = vector.load %arg2[%c1_12, %c0_13, %c0_14] : memref<6x6x16xbf16, #tpu.memory_space<vmem>>, vector<1x6x16xbf16>
    %14 = vector.shape_cast %13 : vector<1x6x16xbf16> to vector<6x16xbf16>
    %cst_15 = arith.constant dense<0.000000e+00> : vector<64x16xf32>
    %15 = tpu.matmul %12, %14, %cst_15 {dimension_numbers = #tpu.dot_dimension_numbers<[1], [0], [0], [1], [0, 0, 1, 1], [], []>} : vector<64x6xbf16>, vector<6x16xbf16>, vector<64x16xf32> -> vector<64x16xf32>
    %16 = arith.addf %8, %15 : vector<64x16xf32>
    %c0_16 = arith.constant 0 : index
    %c0_17 = arith.constant 0 : index
    %c1_18 = arith.constant 1 : index
    %c0_19 = arith.constant 0 : index
    %c0_20 = arith.constant 0 : index
    %17 = vector.load %arg1[%c0_16, %c0_17, %c1_18, %c0_19, %c0_20] : memref<1x9x2x9x6xf32, #tpu.memory_space<vmem>>, vector<1x8x1x8x6xf32>
    %18 = vector.shape_cast %17 : vector<1x8x1x8x6xf32> to vector<8x1x8x6xf32>
    %19 = vector.shape_cast %18 : vector<8x1x8x6xf32> to vector<64x6xf32>
    %20 = arith.truncf %19 : vector<64x6xf32> to vector<64x6xbf16>
    %c2 = arith.constant 2 : index
    %c0_21 = arith.constant 0 : index
    %c0_22 = arith.constant 0 : index
    %21 = vector.load %arg2[%c2, %c0_21, %c0_22] : memref<6x6x16xbf16, #tpu.memory_space<vmem>>, vector<1x6x16xbf16>
    %22 = vector.shape_cast %21 : vector<1x6x16xbf16> to vector<6x16xbf16>
    %cst_23 = arith.constant dense<0.000000e+00> : vector<64x16xf32>
    %23 = tpu.matmul %20, %22, %cst_23 {dimension_numbers = #tpu.dot_dimension_numbers<[1], [0], [0], [1], [0, 0, 1, 1], [], []>} : vector<64x6xbf16>, vector<6x16xbf16>, vector<64x16xf32> -> vector<64x16xf32>
    %24 = arith.addf %16, %23 : vector<64x16xf32>
    %c0_24 = arith.constant 0 : index
    %c0_25 = arith.constant 0 : index
    %c1_26 = arith.constant 1 : index
    %c1_27 = arith.constant 1 : index
    %c0_28 = arith.constant 0 : index
    %25 = vector.load %arg1[%c0_24, %c0_25, %c1_26, %c1_27, %c0_28] : memref<1x9x2x9x6xf32, #tpu.memory_space<vmem>>, vector<1x8x1x8x6xf32>
    %26 = vector.shape_cast %25 : vector<1x8x1x8x6xf32> to vector<8x1x8x6xf32>
    %27 = vector.shape_cast %26 : vector<8x1x8x6xf32> to vector<64x6xf32>
    %28 = arith.truncf %27 : vector<64x6xf32> to vector<64x6xbf16>
    %c3 = arith.constant 3 : index
    %c0_29 = arith.constant 0 : index
    %c0_30 = arith.constant 0 : index
    %29 = vector.load %arg2[%c3, %c0_29, %c0_30] : memref<6x6x16xbf16, #tpu.memory_space<vmem>>, vector<1x6x16xbf16>
    %30 = vector.shape_cast %29 : vector<1x6x16xbf16> to vector<6x16xbf16>
    %cst_31 = arith.constant dense<0.000000e+00> : vector<64x16xf32>
    %31 = tpu.matmul %28, %30, %cst_31 {dimension_numbers = #tpu.dot_dimension_numbers<[1], [0], [0], [1], [0, 0, 1, 1], [], []>} : vector<64x6xbf16>, vector<6x16xbf16>, vector<64x16xf32> -> vector<64x16xf32>
    %32 = arith.addf %24, %31 : vector<64x16xf32>
    %c0_32 = arith.constant 0 : index
    %c1_33 = arith.constant 1 : index
    %c0_34 = arith.constant 0 : index
    %c0_35 = arith.constant 0 : index
    %c0_36 = arith.constant 0 : index
    %33 = vector.load %arg1[%c0_32, %c1_33, %c0_34, %c0_35, %c0_36] : memref<1x9x2x9x6xf32, #tpu.memory_space<vmem>>, vector<1x8x1x8x6xf32>
    %34 = vector.shape_cast %33 : vector<1x8x1x8x6xf32> to vector<8x1x8x6xf32>
    %35 = vector.shape_cast %34 : vector<8x1x8x6xf32> to vector<64x6xf32>
    %36 = arith.truncf %35 : vector<64x6xf32> to vector<64x6xbf16>
    %c4 = arith.constant 4 : index
    %c0_37 = arith.constant 0 : index
    %c0_38 = arith.constant 0 : index
    %37 = vector.load %arg2[%c4, %c0_37, %c0_38] : memref<6x6x16xbf16, #tpu.memory_space<vmem>>, vector<1x6x16xbf16>
    %38 = vector.shape_cast %37 : vector<1x6x16xbf16> to vector<6x16xbf16>
    %cst_39 = arith.constant dense<0.000000e+00> : vector<64x16xf32>
    %39 = tpu.matmul %36, %38, %cst_39 {dimension_numbers = #tpu.dot_dimension_numbers<[1], [0], [0], [1], [0, 0, 1, 1], [], []>} : vector<64x6xbf16>, vector<6x16xbf16>, vector<64x16xf32> -> vector<64x16xf32>
    %40 = arith.addf %32, %39 : vector<64x16xf32>
    %c0_40 = arith.constant 0 : index
    %c1_41 = arith.constant 1 : index
    %c0_42 = arith.constant 0 : index
    %c1_43 = arith.constant 1 : index
    %c0_44 = arith.constant 0 : index
    %41 = vector.load %arg1[%c0_40, %c1_41, %c0_42, %c1_43, %c0_44] : memref<1x9x2x9x6xf32, #tpu.memory_space<vmem>>, vector<1x8x1x8x6xf32>
    %42 = vector.shape_cast %41 : vector<1x8x1x8x6xf32> to vector<8x1x8x6xf32>
    %43 = vector.shape_cast %42 : vector<8x1x8x6xf32> to vector<64x6xf32>
    %44 = arith.truncf %43 : vector<64x6xf32> to vector<64x6xbf16>
    %c5 = arith.constant 5 : index
    %c0_45 = arith.constant 0 : index
    %c0_46 = arith.constant 0 : index
    %45 = vector.load %arg2[%c5, %c0_45, %c0_46] : memref<6x6x16xbf16, #tpu.memory_space<vmem>>, vector<1x6x16xbf16>
    %46 = vector.shape_cast %45 : vector<1x6x16xbf16> to vector<6x16xbf16>
    %cst_47 = arith.constant dense<0.000000e+00> : vector<64x16xf32>
    %47 = tpu.matmul %44, %46, %cst_47 {dimension_numbers = #tpu.dot_dimension_numbers<[1], [0], [0], [1], [0, 0, 1, 1], [], []>} : vector<64x6xbf16>, vector<6x16xbf16>, vector<64x16xf32> -> vector<64x16xf32>
    %48 = arith.addf %40, %47 : vector<64x16xf32>
    %c0_48 = arith.constant 0 : index
    %c0_49 = arith.constant 0 : index
    %49 = vector.load %arg3[%c0_48, %c0_49] : memref<1x16xf32, #tpu.memory_space<vmem>>, vector<1x16xf32>
    %50 = vector.broadcast %49 : vector<1x16xf32> to vector<64x16xf32>
    %51 = arith.addf %48, %50 : vector<64x16xf32>
    %cst_50 = arith.constant 0.000000e+00 : f32
    %52 = vector.broadcast %cst_50 : f32 to vector<64x16xf32>
    %53 = arith.cmpf oge, %51, %52 : vector<64x16xf32>
    %cst_51 = arith.constant 2.000000e-01 : f32
    %54 = vector.broadcast %cst_51 : f32 to vector<64x16xf32>
    %55 = arith.mulf %51, %54 : vector<64x16xf32>
    %56 = arith.select %53, %51, %55 : vector<64x16xi1>, vector<64x16xf32>
    %57 = vector.shape_cast %56 : vector<64x16xf32> to vector<1x64x16xf32>
    %c0_52 = arith.constant 0 : index
    %c0_53 = arith.constant 0 : index
    %c0_54 = arith.constant 0 : index
    %58 = vector.load %arg4[%c0_52, %c0_53, %c0_54] : memref<1x64x16xf32, #tpu.memory_space<vmem>>, vector<1x64x16xf32>
    tpu.vector_store %arg4[%c0_52, %c0_53, %c0_54], %57 {strides = array<i32>} : memref<1x64x16xf32, #tpu.memory_space<vmem>>, vector<1x64x16xf32>,
    return
  }
  func.func @transform_0(%arg0: i32) -> (i32, i32, i32, i32, i32) {
    %c0_i32 = arith.constant 0 : i32
    %c0_i32_0 = arith.constant 0 : i32
    %c0_i32_1 = arith.constant 0 : i32
    %c0_i32_2 = arith.constant 0 : i32
    %c0_i32_3 = arith.constant 0 : i32
    return %arg0, %c0_i32, %c0_i32_0, %c0_i32_1, %c0_i32_2 : i32, i32, i32, i32, i32
  }
  func.func @transform_1(%arg0: i32) -> (i32, i32, i32) {
    %c0_i32 = arith.constant 0 : i32
    %c0_i32_0 = arith.constant 0 : i32
    %c0_i32_1 = arith.constant 0 : i32
    %c0_i32_2 = arith.constant 0 : i32
    return %c0_i32, %c0_i32_0, %c0_i32_1 : i32, i32, i32
  }
  func.func @transform_2(%arg0: i32) -> (i32, i32) {
    %c0_i32 = arith.constant 0 : i32
    %c0_i32_0 = arith.constant 0 : i32
    %c0_i32_1 = arith.constant 0 : i32
    return %c0_i32, %c0_i32_0 : i32, i32
  }
  func.func @transform_3(%arg0: i32) -> (i32, i32, i32) {
    %c0_i32 = arith.constant 0 : i32
    %c0_i32_0 = arith.constant 0 : i32
    %c0_i32_1 = arith.constant 0 : i32
    return %arg0, %c0_i32, %c0_i32_0 : i32, i32, i32
  }
}

module attributes {stable_mosaic.version = 11 : i64} {
  func.func @_dwsep_block_kernel(%arg0: i32, %arg1: memref<1x5x2x5x32xf32, #tpu.memory_space<vmem>>, %arg2: memref<6x32x32xbf16, #tpu.memory_space<vmem>>, %arg3: memref<1x32xf32, #tpu.memory_space<vmem>>, %arg4: memref<1x16x32xf32, #tpu.memory_space<vmem>>) attributes {dimension_semantics = [#tpu.dimension_semantics<parallel>], iteration_bounds = array<i64: 2>, scalar_prefetch = 0 : i64, scratch_operands = 0 : i64, tpu.core_type = #tpu.core_type<tc>, window_params = [{transform_indices = @transform_0, window_bounds = array<i64: 1, 5, 2, 5, 32>}, {pipeline_mode = #tpu.pipeline_mode<synchronous>, transform_indices = @transform_1, window_bounds = array<i64: 6, 32, 32>}, {pipeline_mode = #tpu.pipeline_mode<synchronous>, transform_indices = @transform_2, window_bounds = array<i64: 1, 32>}, {transform_indices = @transform_3, window_bounds = array<i64: 1, 16, 32>}]} {
    %cst = arith.constant 0.000000e+00 : f32
    %0 = vector.broadcast %cst : f32 to vector<16x32xf32>
    %c0 = arith.constant 0 : index
    %c0_0 = arith.constant 0 : index
    %c0_1 = arith.constant 0 : index
    %c0_2 = arith.constant 0 : index
    %c0_3 = arith.constant 0 : index
    %1 = vector.load %arg1[%c0, %c0_0, %c0_1, %c0_2, %c0_3] : memref<1x5x2x5x32xf32, #tpu.memory_space<vmem>>, vector<1x4x1x4x32xf32>
    %2 = vector.shape_cast %1 : vector<1x4x1x4x32xf32> to vector<4x1x4x32xf32>
    %3 = vector.shape_cast %2 : vector<4x1x4x32xf32> to vector<16x32xf32>
    %4 = arith.truncf %3 : vector<16x32xf32> to vector<16x32xbf16>
    %c0_4 = arith.constant 0 : index
    %c0_5 = arith.constant 0 : index
    %c0_6 = arith.constant 0 : index
    %5 = vector.load %arg2[%c0_4, %c0_5, %c0_6] : memref<6x32x32xbf16, #tpu.memory_space<vmem>>, vector<1x32x32xbf16>
    %6 = vector.shape_cast %5 : vector<1x32x32xbf16> to vector<32x32xbf16>
    %cst_7 = arith.constant dense<0.000000e+00> : vector<16x32xf32>
    %7 = tpu.matmul %4, %6, %cst_7 {dimension_numbers = #tpu.dot_dimension_numbers<[1], [0], [0], [1], [0, 0, 1, 1], [], []>} : vector<16x32xbf16>, vector<32x32xbf16>, vector<16x32xf32> -> vector<16x32xf32>
    %8 = arith.addf %0, %7 : vector<16x32xf32>
    %c0_8 = arith.constant 0 : index
    %c0_9 = arith.constant 0 : index
    %c0_10 = arith.constant 0 : index
    %c1 = arith.constant 1 : index
    %c0_11 = arith.constant 0 : index
    %9 = vector.load %arg1[%c0_8, %c0_9, %c0_10, %c1, %c0_11] : memref<1x5x2x5x32xf32, #tpu.memory_space<vmem>>, vector<1x4x1x4x32xf32>
    %10 = vector.shape_cast %9 : vector<1x4x1x4x32xf32> to vector<4x1x4x32xf32>
    %11 = vector.shape_cast %10 : vector<4x1x4x32xf32> to vector<16x32xf32>
    %12 = arith.truncf %11 : vector<16x32xf32> to vector<16x32xbf16>
    %c1_12 = arith.constant 1 : index
    %c0_13 = arith.constant 0 : index
    %c0_14 = arith.constant 0 : index
    %13 = vector.load %arg2[%c1_12, %c0_13, %c0_14] : memref<6x32x32xbf16, #tpu.memory_space<vmem>>, vector<1x32x32xbf16>
    %14 = vector.shape_cast %13 : vector<1x32x32xbf16> to vector<32x32xbf16>
    %cst_15 = arith.constant dense<0.000000e+00> : vector<16x32xf32>
    %15 = tpu.matmul %12, %14, %cst_15 {dimension_numbers = #tpu.dot_dimension_numbers<[1], [0], [0], [1], [0, 0, 1, 1], [], []>} : vector<16x32xbf16>, vector<32x32xbf16>, vector<16x32xf32> -> vector<16x32xf32>
    %16 = arith.addf %8, %15 : vector<16x32xf32>
    %c0_16 = arith.constant 0 : index
    %c0_17 = arith.constant 0 : index
    %c1_18 = arith.constant 1 : index
    %c0_19 = arith.constant 0 : index
    %c0_20 = arith.constant 0 : index
    %17 = vector.load %arg1[%c0_16, %c0_17, %c1_18, %c0_19, %c0_20] : memref<1x5x2x5x32xf32, #tpu.memory_space<vmem>>, vector<1x4x1x4x32xf32>
    %18 = vector.shape_cast %17 : vector<1x4x1x4x32xf32> to vector<4x1x4x32xf32>
    %19 = vector.shape_cast %18 : vector<4x1x4x32xf32> to vector<16x32xf32>
    %20 = arith.truncf %19 : vector<16x32xf32> to vector<16x32xbf16>
    %c2 = arith.constant 2 : index
    %c0_21 = arith.constant 0 : index
    %c0_22 = arith.constant 0 : index
    %21 = vector.load %arg2[%c2, %c0_21, %c0_22] : memref<6x32x32xbf16, #tpu.memory_space<vmem>>, vector<1x32x32xbf16>
    %22 = vector.shape_cast %21 : vector<1x32x32xbf16> to vector<32x32xbf16>
    %cst_23 = arith.constant dense<0.000000e+00> : vector<16x32xf32>
    %23 = tpu.matmul %20, %22, %cst_23 {dimension_numbers = #tpu.dot_dimension_numbers<[1], [0], [0], [1], [0, 0, 1, 1], [], []>} : vector<16x32xbf16>, vector<32x32xbf16>, vector<16x32xf32> -> vector<16x32xf32>
    %24 = arith.addf %16, %23 : vector<16x32xf32>
    %c0_24 = arith.constant 0 : index
    %c0_25 = arith.constant 0 : index
    %c1_26 = arith.constant 1 : index
    %c1_27 = arith.constant 1 : index
    %c0_28 = arith.constant 0 : index
    %25 = vector.load %arg1[%c0_24, %c0_25, %c1_26, %c1_27, %c0_28] : memref<1x5x2x5x32xf32, #tpu.memory_space<vmem>>, vector<1x4x1x4x32xf32>
    %26 = vector.shape_cast %25 : vector<1x4x1x4x32xf32> to vector<4x1x4x32xf32>
    %27 = vector.shape_cast %26 : vector<4x1x4x32xf32> to vector<16x32xf32>
    %28 = arith.truncf %27 : vector<16x32xf32> to vector<16x32xbf16>
    %c3 = arith.constant 3 : index
    %c0_29 = arith.constant 0 : index
    %c0_30 = arith.constant 0 : index
    %29 = vector.load %arg2[%c3, %c0_29, %c0_30] : memref<6x32x32xbf16, #tpu.memory_space<vmem>>, vector<1x32x32xbf16>
    %30 = vector.shape_cast %29 : vector<1x32x32xbf16> to vector<32x32xbf16>
    %cst_31 = arith.constant dense<0.000000e+00> : vector<16x32xf32>
    %31 = tpu.matmul %28, %30, %cst_31 {dimension_numbers = #tpu.dot_dimension_numbers<[1], [0], [0], [1], [0, 0, 1, 1], [], []>} : vector<16x32xbf16>, vector<32x32xbf16>, vector<16x32xf32> -> vector<16x32xf32>
    %32 = arith.addf %24, %31 : vector<16x32xf32>
    %c0_32 = arith.constant 0 : index
    %c1_33 = arith.constant 1 : index
    %c0_34 = arith.constant 0 : index
    %c0_35 = arith.constant 0 : index
    %c0_36 = arith.constant 0 : index
    %33 = vector.load %arg1[%c0_32, %c1_33, %c0_34, %c0_35, %c0_36] : memref<1x5x2x5x32xf32, #tpu.memory_space<vmem>>, vector<1x4x1x4x32xf32>
    %34 = vector.shape_cast %33 : vector<1x4x1x4x32xf32> to vector<4x1x4x32xf32>
    %35 = vector.shape_cast %34 : vector<4x1x4x32xf32> to vector<16x32xf32>
    %36 = arith.truncf %35 : vector<16x32xf32> to vector<16x32xbf16>
    %c4 = arith.constant 4 : index
    %c0_37 = arith.constant 0 : index
    %c0_38 = arith.constant 0 : index
    %37 = vector.load %arg2[%c4, %c0_37, %c0_38] : memref<6x32x32xbf16, #tpu.memory_space<vmem>>, vector<1x32x32xbf16>
    %38 = vector.shape_cast %37 : vector<1x32x32xbf16> to vector<32x32xbf16>
    %cst_39 = arith.constant dense<0.000000e+00> : vector<16x32xf32>
    %39 = tpu.matmul %36, %38, %cst_39 {dimension_numbers = #tpu.dot_dimension_numbers<[1], [0], [0], [1], [0, 0, 1, 1], [], []>} : vector<16x32xbf16>, vector<32x32xbf16>, vector<16x32xf32> -> vector<16x32xf32>
    %40 = arith.addf %32, %39 : vector<16x32xf32>
    %c0_40 = arith.constant 0 : index
    %c1_41 = arith.constant 1 : index
    %c0_42 = arith.constant 0 : index
    %c1_43 = arith.constant 1 : index
    %c0_44 = arith.constant 0 : index
    %41 = vector.load %arg1[%c0_40, %c1_41, %c0_42, %c1_43, %c0_44] : memref<1x5x2x5x32xf32, #tpu.memory_space<vmem>>, vector<1x4x1x4x32xf32>
    %42 = vector.shape_cast %41 : vector<1x4x1x4x32xf32> to vector<4x1x4x32xf32>
    %43 = vector.shape_cast %42 : vector<4x1x4x32xf32> to vector<16x32xf32>
    %44 = arith.truncf %43 : vector<16x32xf32> to vector<16x32xbf16>
    %c5 = arith.constant 5 : index
    %c0_45 = arith.constant 0 : index
    %c0_46 = arith.constant 0 : index
    %45 = vector.load %arg2[%c5, %c0_45, %c0_46] : memref<6x32x32xbf16, #tpu.memory_space<vmem>>, vector<1x32x32xbf16>
    %46 = vector.shape_cast %45 : vector<1x32x32xbf16> to vector<32x32xbf16>
    %cst_47 = arith.constant dense<0.000000e+00> : vector<16x32xf32>
    %47 = tpu.matmul %44, %46, %cst_47 {dimension_numbers = #tpu.dot_dimension_numbers<[1], [0], [0], [1], [0, 0, 1, 1], [], []>} : vector<16x32xbf16>, vector<32x32xbf16>, vector<16x32xf32> -> vector<16x32xf32>
    %48 = arith.addf %40, %47 : vector<16x32xf32>
    %c0_48 = arith.constant 0 : index
    %c0_49 = arith.constant 0 : index
    %49 = vector.load %arg3[%c0_48, %c0_49] : memref<1x32xf32, #tpu.memory_space<vmem>>, vector<1x32xf32>
    %50 = vector.broadcast %49 : vector<1x32xf32> to vector<16x32xf32>
    %51 = arith.addf %48, %50 : vector<16x32xf32>
    %cst_50 = arith.constant 0.000000e+00 : f32
    %52 = vector.broadcast %cst_50 : f32 to vector<16x32xf32>
    %53 = arith.cmpf oge, %51, %52 : vector<16x32xf32>
    %cst_51 = arith.constant 2.000000e-01 : f32
    %54 = vector.broadcast %cst_51 : f32 to vector<16x32xf32>
    %55 = arith.mulf %51, %54 : vector<16x32xf32>
    %56 = arith.select %53, %51, %55 : vector<16x32xi1>, vector<16x32xf32>
    %57 = vector.shape_cast %56 : vector<16x32xf32> to vector<1x16x32xf32>
    %c0_52 = arith.constant 0 : index
    %c0_53 = arith.constant 0 : index
    %c0_54 = arith.constant 0 : index
    %58 = vector.load %arg4[%c0_52, %c0_53, %c0_54] : memref<1x16x32xf32, #tpu.memory_space<vmem>>, vector<1x16x32xf32>
    tpu.vector_store %arg4[%c0_52, %c0_53, %c0_54], %57 {strides = array<i32>} : memref<1x16x32xf32, #tpu.memory_space<vmem>>, vector<1x16x32xf32>,
    return
  }
  func.func @transform_0(%arg0: i32) -> (i32, i32, i32, i32, i32) {
    %c0_i32 = arith.constant 0 : i32
    %c0_i32_0 = arith.constant 0 : i32
    %c0_i32_1 = arith.constant 0 : i32
    %c0_i32_2 = arith.constant 0 : i32
    %c0_i32_3 = arith.constant 0 : i32
    return %arg0, %c0_i32, %c0_i32_0, %c0_i32_1, %c0_i32_2 : i32, i32, i32, i32, i32
  }
  func.func @transform_1(%arg0: i32) -> (i32, i32, i32) {
    %c0_i32 = arith.constant 0 : i32
    %c0_i32_0 = arith.constant 0 : i32
    %c0_i32_1 = arith.constant 0 : i32
    %c0_i32_2 = arith.constant 0 : i32
    return %c0_i32, %c0_i32_0, %c0_i32_1 : i32, i32, i32
  }
  func.func @transform_2(%arg0: i32) -> (i32, i32) {
    %c0_i32 = arith.constant 0 : i32
    %c0_i32_0 = arith.constant 0 : i32
    %c0_i32_1 = arith.constant 0 : i32
    return %c0_i32, %c0_i32_0 : i32, i32
  }
  func.func @transform_3(%arg0: i32) -> (i32, i32, i32) {
    %c0_i32 = arith.constant 0 : i32
    %c0_i32_0 = arith.constant 0 : i32
    %c0_i32_1 = arith.constant 0 : i32
    return %arg0, %c0_i32, %c0_i32_0 : i32, i32, i32
  }
}

module attributes {stable_mosaic.version = 11 : i64} {
  func.func @_dwsep_block_kernel(%arg0: i32, %arg1: memref<1x3x2x3x64xf32, #tpu.memory_space<vmem>>, %arg2: memref<6x64x64xbf16, #tpu.memory_space<vmem>>, %arg3: memref<1x64xf32, #tpu.memory_space<vmem>>, %arg4: memref<1x4x64xf32, #tpu.memory_space<vmem>>) attributes {dimension_semantics = [#tpu.dimension_semantics<parallel>], iteration_bounds = array<i64: 2>, scalar_prefetch = 0 : i64, scratch_operands = 0 : i64, tpu.core_type = #tpu.core_type<tc>, window_params = [{transform_indices = @transform_0, window_bounds = array<i64: 1, 3, 2, 3, 64>}, {pipeline_mode = #tpu.pipeline_mode<synchronous>, transform_indices = @transform_1, window_bounds = array<i64: 6, 64, 64>}, {pipeline_mode = #tpu.pipeline_mode<synchronous>, transform_indices = @transform_2, window_bounds = array<i64: 1, 64>}, {transform_indices = @transform_3, window_bounds = array<i64: 1, 4, 64>}]} {
    %cst = arith.constant 0.000000e+00 : f32
    %0 = vector.broadcast %cst : f32 to vector<4x64xf32>
    %c0 = arith.constant 0 : index
    %c0_0 = arith.constant 0 : index
    %c0_1 = arith.constant 0 : index
    %c0_2 = arith.constant 0 : index
    %c0_3 = arith.constant 0 : index
    %1 = vector.load %arg1[%c0, %c0_0, %c0_1, %c0_2, %c0_3] : memref<1x3x2x3x64xf32, #tpu.memory_space<vmem>>, vector<1x2x1x2x64xf32>
    %2 = vector.shape_cast %1 : vector<1x2x1x2x64xf32> to vector<2x1x2x64xf32>
    %3 = vector.shape_cast %2 : vector<2x1x2x64xf32> to vector<4x64xf32>
    %4 = arith.truncf %3 : vector<4x64xf32> to vector<4x64xbf16>
    %c0_4 = arith.constant 0 : index
    %c0_5 = arith.constant 0 : index
    %c0_6 = arith.constant 0 : index
    %5 = vector.load %arg2[%c0_4, %c0_5, %c0_6] : memref<6x64x64xbf16, #tpu.memory_space<vmem>>, vector<1x64x64xbf16>
    %6 = vector.shape_cast %5 : vector<1x64x64xbf16> to vector<64x64xbf16>
    %cst_7 = arith.constant dense<0.000000e+00> : vector<4x64xf32>
    %7 = tpu.matmul %4, %6, %cst_7 {dimension_numbers = #tpu.dot_dimension_numbers<[1], [0], [0], [1], [0, 0, 1, 1], [], []>} : vector<4x64xbf16>, vector<64x64xbf16>, vector<4x64xf32> -> vector<4x64xf32>
    %8 = arith.addf %0, %7 : vector<4x64xf32>
    %c0_8 = arith.constant 0 : index
    %c0_9 = arith.constant 0 : index
    %c0_10 = arith.constant 0 : index
    %c1 = arith.constant 1 : index
    %c0_11 = arith.constant 0 : index
    %9 = vector.load %arg1[%c0_8, %c0_9, %c0_10, %c1, %c0_11] : memref<1x3x2x3x64xf32, #tpu.memory_space<vmem>>, vector<1x2x1x2x64xf32>
    %10 = vector.shape_cast %9 : vector<1x2x1x2x64xf32> to vector<2x1x2x64xf32>
    %11 = vector.shape_cast %10 : vector<2x1x2x64xf32> to vector<4x64xf32>
    %12 = arith.truncf %11 : vector<4x64xf32> to vector<4x64xbf16>
    %c1_12 = arith.constant 1 : index
    %c0_13 = arith.constant 0 : index
    %c0_14 = arith.constant 0 : index
    %13 = vector.load %arg2[%c1_12, %c0_13, %c0_14] : memref<6x64x64xbf16, #tpu.memory_space<vmem>>, vector<1x64x64xbf16>
    %14 = vector.shape_cast %13 : vector<1x64x64xbf16> to vector<64x64xbf16>
    %cst_15 = arith.constant dense<0.000000e+00> : vector<4x64xf32>
    %15 = tpu.matmul %12, %14, %cst_15 {dimension_numbers = #tpu.dot_dimension_numbers<[1], [0], [0], [1], [0, 0, 1, 1], [], []>} : vector<4x64xbf16>, vector<64x64xbf16>, vector<4x64xf32> -> vector<4x64xf32>
    %16 = arith.addf %8, %15 : vector<4x64xf32>
    %c0_16 = arith.constant 0 : index
    %c0_17 = arith.constant 0 : index
    %c1_18 = arith.constant 1 : index
    %c0_19 = arith.constant 0 : index
    %c0_20 = arith.constant 0 : index
    %17 = vector.load %arg1[%c0_16, %c0_17, %c1_18, %c0_19, %c0_20] : memref<1x3x2x3x64xf32, #tpu.memory_space<vmem>>, vector<1x2x1x2x64xf32>
    %18 = vector.shape_cast %17 : vector<1x2x1x2x64xf32> to vector<2x1x2x64xf32>
    %19 = vector.shape_cast %18 : vector<2x1x2x64xf32> to vector<4x64xf32>
    %20 = arith.truncf %19 : vector<4x64xf32> to vector<4x64xbf16>
    %c2 = arith.constant 2 : index
    %c0_21 = arith.constant 0 : index
    %c0_22 = arith.constant 0 : index
    %21 = vector.load %arg2[%c2, %c0_21, %c0_22] : memref<6x64x64xbf16, #tpu.memory_space<vmem>>, vector<1x64x64xbf16>
    %22 = vector.shape_cast %21 : vector<1x64x64xbf16> to vector<64x64xbf16>
    %cst_23 = arith.constant dense<0.000000e+00> : vector<4x64xf32>
    %23 = tpu.matmul %20, %22, %cst_23 {dimension_numbers = #tpu.dot_dimension_numbers<[1], [0], [0], [1], [0, 0, 1, 1], [], []>} : vector<4x64xbf16>, vector<64x64xbf16>, vector<4x64xf32> -> vector<4x64xf32>
    %24 = arith.addf %16, %23 : vector<4x64xf32>
    %c0_24 = arith.constant 0 : index
    %c0_25 = arith.constant 0 : index
    %c1_26 = arith.constant 1 : index
    %c1_27 = arith.constant 1 : index
    %c0_28 = arith.constant 0 : index
    %25 = vector.load %arg1[%c0_24, %c0_25, %c1_26, %c1_27, %c0_28] : memref<1x3x2x3x64xf32, #tpu.memory_space<vmem>>, vector<1x2x1x2x64xf32>
    %26 = vector.shape_cast %25 : vector<1x2x1x2x64xf32> to vector<2x1x2x64xf32>
    %27 = vector.shape_cast %26 : vector<2x1x2x64xf32> to vector<4x64xf32>
    %28 = arith.truncf %27 : vector<4x64xf32> to vector<4x64xbf16>
    %c3 = arith.constant 3 : index
    %c0_29 = arith.constant 0 : index
    %c0_30 = arith.constant 0 : index
    %29 = vector.load %arg2[%c3, %c0_29, %c0_30] : memref<6x64x64xbf16, #tpu.memory_space<vmem>>, vector<1x64x64xbf16>
    %30 = vector.shape_cast %29 : vector<1x64x64xbf16> to vector<64x64xbf16>
    %cst_31 = arith.constant dense<0.000000e+00> : vector<4x64xf32>
    %31 = tpu.matmul %28, %30, %cst_31 {dimension_numbers = #tpu.dot_dimension_numbers<[1], [0], [0], [1], [0, 0, 1, 1], [], []>} : vector<4x64xbf16>, vector<64x64xbf16>, vector<4x64xf32> -> vector<4x64xf32>
    %32 = arith.addf %24, %31 : vector<4x64xf32>
    %c0_32 = arith.constant 0 : index
    %c1_33 = arith.constant 1 : index
    %c0_34 = arith.constant 0 : index
    %c0_35 = arith.constant 0 : index
    %c0_36 = arith.constant 0 : index
    %33 = vector.load %arg1[%c0_32, %c1_33, %c0_34, %c0_35, %c0_36] : memref<1x3x2x3x64xf32, #tpu.memory_space<vmem>>, vector<1x2x1x2x64xf32>
    %34 = vector.shape_cast %33 : vector<1x2x1x2x64xf32> to vector<2x1x2x64xf32>
    %35 = vector.shape_cast %34 : vector<2x1x2x64xf32> to vector<4x64xf32>
    %36 = arith.truncf %35 : vector<4x64xf32> to vector<4x64xbf16>
    %c4 = arith.constant 4 : index
    %c0_37 = arith.constant 0 : index
    %c0_38 = arith.constant 0 : index
    %37 = vector.load %arg2[%c4, %c0_37, %c0_38] : memref<6x64x64xbf16, #tpu.memory_space<vmem>>, vector<1x64x64xbf16>
    %38 = vector.shape_cast %37 : vector<1x64x64xbf16> to vector<64x64xbf16>
    %cst_39 = arith.constant dense<0.000000e+00> : vector<4x64xf32>
    %39 = tpu.matmul %36, %38, %cst_39 {dimension_numbers = #tpu.dot_dimension_numbers<[1], [0], [0], [1], [0, 0, 1, 1], [], []>} : vector<4x64xbf16>, vector<64x64xbf16>, vector<4x64xf32> -> vector<4x64xf32>
    %40 = arith.addf %32, %39 : vector<4x64xf32>
    %c0_40 = arith.constant 0 : index
    %c1_41 = arith.constant 1 : index
    %c0_42 = arith.constant 0 : index
    %c1_43 = arith.constant 1 : index
    %c0_44 = arith.constant 0 : index
    %41 = vector.load %arg1[%c0_40, %c1_41, %c0_42, %c1_43, %c0_44] : memref<1x3x2x3x64xf32, #tpu.memory_space<vmem>>, vector<1x2x1x2x64xf32>
    %42 = vector.shape_cast %41 : vector<1x2x1x2x64xf32> to vector<2x1x2x64xf32>
    %43 = vector.shape_cast %42 : vector<2x1x2x64xf32> to vector<4x64xf32>
    %44 = arith.truncf %43 : vector<4x64xf32> to vector<4x64xbf16>
    %c5 = arith.constant 5 : index
    %c0_45 = arith.constant 0 : index
    %c0_46 = arith.constant 0 : index
    %45 = vector.load %arg2[%c5, %c0_45, %c0_46] : memref<6x64x64xbf16, #tpu.memory_space<vmem>>, vector<1x64x64xbf16>
    %46 = vector.shape_cast %45 : vector<1x64x64xbf16> to vector<64x64xbf16>
    %cst_47 = arith.constant dense<0.000000e+00> : vector<4x64xf32>
    %47 = tpu.matmul %44, %46, %cst_47 {dimension_numbers = #tpu.dot_dimension_numbers<[1], [0], [0], [1], [0, 0, 1, 1], [], []>} : vector<4x64xbf16>, vector<64x64xbf16>, vector<4x64xf32> -> vector<4x64xf32>
    %48 = arith.addf %40, %47 : vector<4x64xf32>
    %c0_48 = arith.constant 0 : index
    %c0_49 = arith.constant 0 : index
    %49 = vector.load %arg3[%c0_48, %c0_49] : memref<1x64xf32, #tpu.memory_space<vmem>>, vector<1x64xf32>
    %50 = vector.broadcast %49 : vector<1x64xf32> to vector<4x64xf32>
    %51 = arith.addf %48, %50 : vector<4x64xf32>
    %cst_50 = arith.constant 0.000000e+00 : f32
    %52 = vector.broadcast %cst_50 : f32 to vector<4x64xf32>
    %53 = arith.cmpf oge, %51, %52 : vector<4x64xf32>
    %cst_51 = arith.constant 2.000000e-01 : f32
    %54 = vector.broadcast %cst_51 : f32 to vector<4x64xf32>
    %55 = arith.mulf %51, %54 : vector<4x64xf32>
    %56 = arith.select %53, %51, %55 : vector<4x64xi1>, vector<4x64xf32>
    %57 = vector.shape_cast %56 : vector<4x64xf32> to vector<1x4x64xf32>
    %c0_52 = arith.constant 0 : index
    %c0_53 = arith.constant 0 : index
    %c0_54 = arith.constant 0 : index
    %58 = vector.load %arg4[%c0_52, %c0_53, %c0_54] : memref<1x4x64xf32, #tpu.memory_space<vmem>>, vector<1x4x64xf32>
    tpu.vector_store %arg4[%c0_52, %c0_53, %c0_54], %57 {strides = array<i32>} : memref<1x4x64xf32, #tpu.memory_space<vmem>>, vector<1x4x64xf32>,
    return
  }
  func.func @transform_0(%arg0: i32) -> (i32, i32, i32, i32, i32) {
    %c0_i32 = arith.constant 0 : i32
    %c0_i32_0 = arith.constant 0 : i32
    %c0_i32_1 = arith.constant 0 : i32
    %c0_i32_2 = arith.constant 0 : i32
    %c0_i32_3 = arith.constant 0 : i32
    return %arg0, %c0_i32, %c0_i32_0, %c0_i32_1, %c0_i32_2 : i32, i32, i32, i32, i32
  }
  func.func @transform_1(%arg0: i32) -> (i32, i32, i32) {
    %c0_i32 = arith.constant 0 : i32
    %c0_i32_0 = arith.constant 0 : i32
    %c0_i32_1 = arith.constant 0 : i32
    %c0_i32_2 = arith.constant 0 : i32
    return %c0_i32, %c0_i32_0, %c0_i32_1 : i32, i32, i32
  }
  func.func @transform_2(%arg0: i32) -> (i32, i32) {
    %c0_i32 = arith.constant 0 : i32
    %c0_i32_0 = arith.constant 0 : i32
    %c0_i32_1 = arith.constant 0 : i32
    return %c0_i32, %c0_i32_0 : i32, i32
  }
  func.func @transform_3(%arg0: i32) -> (i32, i32, i32) {
    %c0_i32 = arith.constant 0 : i32
    %c0_i32_0 = arith.constant 0 : i32
    %c0_i32_1 = arith.constant 0 : i32
    return %arg0, %c0_i32, %c0_i32_0 : i32, i32, i32
  }
}

module attributes {stable_mosaic.version = 11 : i64} {
  func.func @_dwsep_block_kernel(%arg0: i32, %arg1: memref<1x2x2x2x128xf32, #tpu.memory_space<vmem>>, %arg2: memref<6x128x128xbf16, #tpu.memory_space<vmem>>, %arg3: memref<1x128xf32, #tpu.memory_space<vmem>>, %arg4: memref<1x1x128xf32, #tpu.memory_space<vmem>>) attributes {dimension_semantics = [#tpu.dimension_semantics<parallel>], iteration_bounds = array<i64: 2>, scalar_prefetch = 0 : i64, scratch_operands = 0 : i64, tpu.core_type = #tpu.core_type<tc>, window_params = [{transform_indices = @transform_0, window_bounds = array<i64: 1, 2, 2, 2, 128>}, {pipeline_mode = #tpu.pipeline_mode<synchronous>, transform_indices = @transform_1, window_bounds = array<i64: 6, 128, 128>}, {pipeline_mode = #tpu.pipeline_mode<synchronous>, transform_indices = @transform_2, window_bounds = array<i64: 1, 128>}, {transform_indices = @transform_3, window_bounds = array<i64: 1, 1, 128>}]} {
    %cst = arith.constant 0.000000e+00 : f32
    %0 = vector.broadcast %cst : f32 to vector<1x128xf32>
    %c0 = arith.constant 0 : index
    %c0_0 = arith.constant 0 : index
    %c0_1 = arith.constant 0 : index
    %c0_2 = arith.constant 0 : index
    %c0_3 = arith.constant 0 : index
    %1 = vector.load %arg1[%c0, %c0_0, %c0_1, %c0_2, %c0_3] : memref<1x2x2x2x128xf32, #tpu.memory_space<vmem>>, vector<1x1x1x1x128xf32>
    %2 = vector.shape_cast %1 : vector<1x1x1x1x128xf32> to vector<1x1x1x128xf32>
    %3 = vector.shape_cast %2 : vector<1x1x1x128xf32> to vector<1x128xf32>
    %4 = arith.truncf %3 : vector<1x128xf32> to vector<1x128xbf16>
    %c0_4 = arith.constant 0 : index
    %c0_5 = arith.constant 0 : index
    %c0_6 = arith.constant 0 : index
    %5 = vector.load %arg2[%c0_4, %c0_5, %c0_6] : memref<6x128x128xbf16, #tpu.memory_space<vmem>>, vector<1x128x128xbf16>
    %6 = vector.shape_cast %5 : vector<1x128x128xbf16> to vector<128x128xbf16>
    %cst_7 = arith.constant dense<0.000000e+00> : vector<1x128xf32>
    %7 = tpu.matmul %4, %6, %cst_7 {dimension_numbers = #tpu.dot_dimension_numbers<[1], [0], [0], [1], [0, 0, 1, 1], [], []>} : vector<1x128xbf16>, vector<128x128xbf16>, vector<1x128xf32> -> vector<1x128xf32>
    %8 = arith.addf %0, %7 : vector<1x128xf32>
    %c0_8 = arith.constant 0 : index
    %c0_9 = arith.constant 0 : index
    %c0_10 = arith.constant 0 : index
    %c1 = arith.constant 1 : index
    %c0_11 = arith.constant 0 : index
    %9 = vector.load %arg1[%c0_8, %c0_9, %c0_10, %c1, %c0_11] : memref<1x2x2x2x128xf32, #tpu.memory_space<vmem>>, vector<1x1x1x1x128xf32>
    %10 = vector.shape_cast %9 : vector<1x1x1x1x128xf32> to vector<1x1x1x128xf32>
    %11 = vector.shape_cast %10 : vector<1x1x1x128xf32> to vector<1x128xf32>
    %12 = arith.truncf %11 : vector<1x128xf32> to vector<1x128xbf16>
    %c1_12 = arith.constant 1 : index
    %c0_13 = arith.constant 0 : index
    %c0_14 = arith.constant 0 : index
    %13 = vector.load %arg2[%c1_12, %c0_13, %c0_14] : memref<6x128x128xbf16, #tpu.memory_space<vmem>>, vector<1x128x128xbf16>
    %14 = vector.shape_cast %13 : vector<1x128x128xbf16> to vector<128x128xbf16>
    %cst_15 = arith.constant dense<0.000000e+00> : vector<1x128xf32>
    %15 = tpu.matmul %12, %14, %cst_15 {dimension_numbers = #tpu.dot_dimension_numbers<[1], [0], [0], [1], [0, 0, 1, 1], [], []>} : vector<1x128xbf16>, vector<128x128xbf16>, vector<1x128xf32> -> vector<1x128xf32>
    %16 = arith.addf %8, %15 : vector<1x128xf32>
    %c0_16 = arith.constant 0 : index
    %c0_17 = arith.constant 0 : index
    %c1_18 = arith.constant 1 : index
    %c0_19 = arith.constant 0 : index
    %c0_20 = arith.constant 0 : index
    %17 = vector.load %arg1[%c0_16, %c0_17, %c1_18, %c0_19, %c0_20] : memref<1x2x2x2x128xf32, #tpu.memory_space<vmem>>, vector<1x1x1x1x128xf32>
    %18 = vector.shape_cast %17 : vector<1x1x1x1x128xf32> to vector<1x1x1x128xf32>
    %19 = vector.shape_cast %18 : vector<1x1x1x128xf32> to vector<1x128xf32>
    %20 = arith.truncf %19 : vector<1x128xf32> to vector<1x128xbf16>
    %c2 = arith.constant 2 : index
    %c0_21 = arith.constant 0 : index
    %c0_22 = arith.constant 0 : index
    %21 = vector.load %arg2[%c2, %c0_21, %c0_22] : memref<6x128x128xbf16, #tpu.memory_space<vmem>>, vector<1x128x128xbf16>
    %22 = vector.shape_cast %21 : vector<1x128x128xbf16> to vector<128x128xbf16>
    %cst_23 = arith.constant dense<0.000000e+00> : vector<1x128xf32>
    %23 = tpu.matmul %20, %22, %cst_23 {dimension_numbers = #tpu.dot_dimension_numbers<[1], [0], [0], [1], [0, 0, 1, 1], [], []>} : vector<1x128xbf16>, vector<128x128xbf16>, vector<1x128xf32> -> vector<1x128xf32>
    %24 = arith.addf %16, %23 : vector<1x128xf32>
    %c0_24 = arith.constant 0 : index
    %c0_25 = arith.constant 0 : index
    %c1_26 = arith.constant 1 : index
    %c1_27 = arith.constant 1 : index
    %c0_28 = arith.constant 0 : index
    %25 = vector.load %arg1[%c0_24, %c0_25, %c1_26, %c1_27, %c0_28] : memref<1x2x2x2x128xf32, #tpu.memory_space<vmem>>, vector<1x1x1x1x128xf32>
    %26 = vector.shape_cast %25 : vector<1x1x1x1x128xf32> to vector<1x1x1x128xf32>
    %27 = vector.shape_cast %26 : vector<1x1x1x128xf32> to vector<1x128xf32>
    %28 = arith.truncf %27 : vector<1x128xf32> to vector<1x128xbf16>
    %c3 = arith.constant 3 : index
    %c0_29 = arith.constant 0 : index
    %c0_30 = arith.constant 0 : index
    %29 = vector.load %arg2[%c3, %c0_29, %c0_30] : memref<6x128x128xbf16, #tpu.memory_space<vmem>>, vector<1x128x128xbf16>
    %30 = vector.shape_cast %29 : vector<1x128x128xbf16> to vector<128x128xbf16>
    %cst_31 = arith.constant dense<0.000000e+00> : vector<1x128xf32>
    %31 = tpu.matmul %28, %30, %cst_31 {dimension_numbers = #tpu.dot_dimension_numbers<[1], [0], [0], [1], [0, 0, 1, 1], [], []>} : vector<1x128xbf16>, vector<128x128xbf16>, vector<1x128xf32> -> vector<1x128xf32>
    %32 = arith.addf %24, %31 : vector<1x128xf32>
    %c0_32 = arith.constant 0 : index
    %c1_33 = arith.constant 1 : index
    %c0_34 = arith.constant 0 : index
    %c0_35 = arith.constant 0 : index
    %c0_36 = arith.constant 0 : index
    %33 = vector.load %arg1[%c0_32, %c1_33, %c0_34, %c0_35, %c0_36] : memref<1x2x2x2x128xf32, #tpu.memory_space<vmem>>, vector<1x1x1x1x128xf32>
    %34 = vector.shape_cast %33 : vector<1x1x1x1x128xf32> to vector<1x1x1x128xf32>
    %35 = vector.shape_cast %34 : vector<1x1x1x128xf32> to vector<1x128xf32>
    %36 = arith.truncf %35 : vector<1x128xf32> to vector<1x128xbf16>
    %c4 = arith.constant 4 : index
    %c0_37 = arith.constant 0 : index
    %c0_38 = arith.constant 0 : index
    %37 = vector.load %arg2[%c4, %c0_37, %c0_38] : memref<6x128x128xbf16, #tpu.memory_space<vmem>>, vector<1x128x128xbf16>
    %38 = vector.shape_cast %37 : vector<1x128x128xbf16> to vector<128x128xbf16>
    %cst_39 = arith.constant dense<0.000000e+00> : vector<1x128xf32>
    %39 = tpu.matmul %36, %38, %cst_39 {dimension_numbers = #tpu.dot_dimension_numbers<[1], [0], [0], [1], [0, 0, 1, 1], [], []>} : vector<1x128xbf16>, vector<128x128xbf16>, vector<1x128xf32> -> vector<1x128xf32>
    %40 = arith.addf %32, %39 : vector<1x128xf32>
    %c0_40 = arith.constant 0 : index
    %c1_41 = arith.constant 1 : index
    %c0_42 = arith.constant 0 : index
    %c1_43 = arith.constant 1 : index
    %c0_44 = arith.constant 0 : index
    %41 = vector.load %arg1[%c0_40, %c1_41, %c0_42, %c1_43, %c0_44] : memref<1x2x2x2x128xf32, #tpu.memory_space<vmem>>, vector<1x1x1x1x128xf32>
    %42 = vector.shape_cast %41 : vector<1x1x1x1x128xf32> to vector<1x1x1x128xf32>
    %43 = vector.shape_cast %42 : vector<1x1x1x128xf32> to vector<1x128xf32>
    %44 = arith.truncf %43 : vector<1x128xf32> to vector<1x128xbf16>
    %c5 = arith.constant 5 : index
    %c0_45 = arith.constant 0 : index
    %c0_46 = arith.constant 0 : index
    %45 = vector.load %arg2[%c5, %c0_45, %c0_46] : memref<6x128x128xbf16, #tpu.memory_space<vmem>>, vector<1x128x128xbf16>
    %46 = vector.shape_cast %45 : vector<1x128x128xbf16> to vector<128x128xbf16>
    %cst_47 = arith.constant dense<0.000000e+00> : vector<1x128xf32>
    %47 = tpu.matmul %44, %46, %cst_47 {dimension_numbers = #tpu.dot_dimension_numbers<[1], [0], [0], [1], [0, 0, 1, 1], [], []>} : vector<1x128xbf16>, vector<128x128xbf16>, vector<1x128xf32> -> vector<1x128xf32>
    %48 = arith.addf %40, %47 : vector<1x128xf32>
    %c0_48 = arith.constant 0 : index
    %c0_49 = arith.constant 0 : index
    %49 = vector.load %arg3[%c0_48, %c0_49] : memref<1x128xf32, #tpu.memory_space<vmem>>, vector<1x128xf32>
    %50 = arith.addf %48, %49 : vector<1x128xf32>
    %cst_50 = arith.constant 0.000000e+00 : f32
    %51 = vector.broadcast %cst_50 : f32 to vector<1x128xf32>
    %52 = arith.cmpf oge, %50, %51 : vector<1x128xf32>
    %cst_51 = arith.constant 2.000000e-01 : f32
    %53 = vector.broadcast %cst_51 : f32 to vector<1x128xf32>
    %54 = arith.mulf %50, %53 : vector<1x128xf32>
    %55 = arith.select %52, %50, %54 : vector<1x128xi1>, vector<1x128xf32>
    %56 = vector.shape_cast %55 : vector<1x128xf32> to vector<1x1x128xf32>
    %c0_52 = arith.constant 0 : index
    %c0_53 = arith.constant 0 : index
    %c0_54 = arith.constant 0 : index
    %57 = vector.load %arg4[%c0_52, %c0_53, %c0_54] : memref<1x1x128xf32, #tpu.memory_space<vmem>>, vector<1x1x128xf32>
    tpu.vector_store %arg4[%c0_52, %c0_53, %c0_54], %56 {strides = array<i32>} : memref<1x1x128xf32, #tpu.memory_space<vmem>>, vector<1x1x128xf32>,
    return
  }
  func.func @transform_0(%arg0: i32) -> (i32, i32, i32, i32, i32) {
    %c0_i32 = arith.constant 0 : i32
    %c0_i32_0 = arith.constant 0 : i32
    %c0_i32_1 = arith.constant 0 : i32
    %c0_i32_2 = arith.constant 0 : i32
    %c0_i32_3 = arith.constant 0 : i32
    return %arg0, %c0_i32, %c0_i32_0, %c0_i32_1, %c0_i32_2 : i32, i32, i32, i32, i32
  }
  func.func @transform_1(%arg0: i32) -> (i32, i32, i32) {
    %c0_i32 = arith.constant 0 : i32
    %c0_i32_0 = arith.constant 0 : i32
    %c0_i32_1 = arith.constant 0 : i32
    %c0_i32_2 = arith.constant 0 : i32
    return %c0_i32, %c0_i32_0, %c0_i32_1 : i32, i32, i32
  }
  func.func @transform_2(%arg0: i32) -> (i32, i32) {
    %c0_i32 = arith.constant 0 : i32
    %c0_i32_0 = arith.constant 0 : i32
    %c0_i32_1 = arith.constant 0 : i32
    return %c0_i32, %c0_i32_0 : i32, i32
  }
  func.func @transform_3(%arg0: i32) -> (i32, i32, i32) {
    %c0_i32 = arith.constant 0 : i32
    %c0_i32_0 = arith.constant 0 : i32
    %c0_i32_1 = arith.constant 0 : i32
    return %arg0, %c0_i32, %c0_i32_0 : i32, i32, i32
  }
}

module attributes {stable_mosaic.version = 11 : i64} {
  func.func @_dwsep_block_kernel(%arg0: i32, %arg1: memref<1x3x3x128xf32, #tpu.memory_space<vmem>>, %arg2: memref<9x1x128xf32, #tpu.memory_space<vmem>>, %arg3: memref<1x1xf32, #tpu.memory_space<vmem>>, %arg4: memref<1x1x1xf32, #tpu.memory_space<vmem>>) attributes {dimension_semantics = [#tpu.dimension_semantics<parallel>], iteration_bounds = array<i64: 2>, scalar_prefetch = 0 : i64, scratch_operands = 0 : i64, tpu.core_type = #tpu.core_type<tc>, window_params = [{transform_indices = @transform_0, window_bounds = array<i64: 1, 3, 3, 128>}, {pipeline_mode = #tpu.pipeline_mode<synchronous>, transform_indices = @transform_1, window_bounds = array<i64: 9, 1, 128>}, {pipeline_mode = #tpu.pipeline_mode<synchronous>, transform_indices = @transform_2, window_bounds = array<i64: 1, 1>}, {transform_indices = @transform_3, window_bounds = array<i64: 1, 1, 1>}]} {
    %cst = arith.constant 0.000000e+00 : f32
    %0 = vector.broadcast %cst : f32 to vector<1x1xf32>
    %c0 = arith.constant 0 : index
    %c0_0 = arith.constant 0 : index
    %c0_1 = arith.constant 0 : index
    %c0_2 = arith.constant 0 : index
    %1 = vector.load %arg1[%c0, %c0_0, %c0_1, %c0_2] : memref<1x3x3x128xf32, #tpu.memory_space<vmem>>, vector<1x1x1x128xf32>
    %2 = vector.shape_cast %1 : vector<1x1x1x128xf32> to vector<1x1x128xf32>
    %3 = vector.shape_cast %2 : vector<1x1x128xf32> to vector<1x128xf32>
    %c0_3 = arith.constant 0 : index
    %c0_4 = arith.constant 0 : index
    %c0_5 = arith.constant 0 : index
    %4 = vector.load %arg2[%c0_3, %c0_4, %c0_5] : memref<9x1x128xf32, #tpu.memory_space<vmem>>, vector<1x1x128xf32>
    %5 = vector.shape_cast %4 : vector<1x1x128xf32> to vector<1x128xf32>
    %6 = arith.mulf %3, %5 : vector<1x128xf32>
    %cst_6 = arith.constant dense<0.000000e+00> : vector<1xf32>
    %7 = vector.multi_reduction <add>, %6, %cst_6 [1] : vector<1x128xf32> to vector<1xf32>
    %8 = vector.shape_cast %7 : vector<1xf32> to vector<1x1xf32>
    %9 = arith.addf %0, %8 : vector<1x1xf32>
    %c0_7 = arith.constant 0 : index
    %c0_8 = arith.constant 0 : index
    %c1 = arith.constant 1 : index
    %c0_9 = arith.constant 0 : index
    %10 = vector.load %arg1[%c0_7, %c0_8, %c1, %c0_9] : memref<1x3x3x128xf32, #tpu.memory_space<vmem>>, vector<1x1x1x128xf32>
    %11 = vector.shape_cast %10 : vector<1x1x1x128xf32> to vector<1x1x128xf32>
    %12 = vector.shape_cast %11 : vector<1x1x128xf32> to vector<1x128xf32>
    %c1_10 = arith.constant 1 : index
    %c0_11 = arith.constant 0 : index
    %c0_12 = arith.constant 0 : index
    %13 = vector.load %arg2[%c1_10, %c0_11, %c0_12] : memref<9x1x128xf32, #tpu.memory_space<vmem>>, vector<1x1x128xf32>
    %14 = vector.shape_cast %13 : vector<1x1x128xf32> to vector<1x128xf32>
    %15 = arith.mulf %12, %14 : vector<1x128xf32>
    %cst_13 = arith.constant dense<0.000000e+00> : vector<1xf32>
    %16 = vector.multi_reduction <add>, %15, %cst_13 [1] : vector<1x128xf32> to vector<1xf32>
    %17 = vector.shape_cast %16 : vector<1xf32> to vector<1x1xf32>
    %18 = arith.addf %9, %17 : vector<1x1xf32>
    %c0_14 = arith.constant 0 : index
    %c0_15 = arith.constant 0 : index
    %c2 = arith.constant 2 : index
    %c0_16 = arith.constant 0 : index
    %19 = vector.load %arg1[%c0_14, %c0_15, %c2, %c0_16] : memref<1x3x3x128xf32, #tpu.memory_space<vmem>>, vector<1x1x1x128xf32>
    %20 = vector.shape_cast %19 : vector<1x1x1x128xf32> to vector<1x1x128xf32>
    %21 = vector.shape_cast %20 : vector<1x1x128xf32> to vector<1x128xf32>
    %c2_17 = arith.constant 2 : index
    %c0_18 = arith.constant 0 : index
    %c0_19 = arith.constant 0 : index
    %22 = vector.load %arg2[%c2_17, %c0_18, %c0_19] : memref<9x1x128xf32, #tpu.memory_space<vmem>>, vector<1x1x128xf32>
    %23 = vector.shape_cast %22 : vector<1x1x128xf32> to vector<1x128xf32>
    %24 = arith.mulf %21, %23 : vector<1x128xf32>
    %cst_20 = arith.constant dense<0.000000e+00> : vector<1xf32>
    %25 = vector.multi_reduction <add>, %24, %cst_20 [1] : vector<1x128xf32> to vector<1xf32>
    %26 = vector.shape_cast %25 : vector<1xf32> to vector<1x1xf32>
    %27 = arith.addf %18, %26 : vector<1x1xf32>
    %c0_21 = arith.constant 0 : index
    %c1_22 = arith.constant 1 : index
    %c0_23 = arith.constant 0 : index
    %c0_24 = arith.constant 0 : index
    %28 = vector.load %arg1[%c0_21, %c1_22, %c0_23, %c0_24] : memref<1x3x3x128xf32, #tpu.memory_space<vmem>>, vector<1x1x1x128xf32>
    %29 = vector.shape_cast %28 : vector<1x1x1x128xf32> to vector<1x1x128xf32>
    %30 = vector.shape_cast %29 : vector<1x1x128xf32> to vector<1x128xf32>
    %c3 = arith.constant 3 : index
    %c0_25 = arith.constant 0 : index
    %c0_26 = arith.constant 0 : index
    %31 = vector.load %arg2[%c3, %c0_25, %c0_26] : memref<9x1x128xf32, #tpu.memory_space<vmem>>, vector<1x1x128xf32>
    %32 = vector.shape_cast %31 : vector<1x1x128xf32> to vector<1x128xf32>
    %33 = arith.mulf %30, %32 : vector<1x128xf32>
    %cst_27 = arith.constant dense<0.000000e+00> : vector<1xf32>
    %34 = vector.multi_reduction <add>, %33, %cst_27 [1] : vector<1x128xf32> to vector<1xf32>
    %35 = vector.shape_cast %34 : vector<1xf32> to vector<1x1xf32>
    %36 = arith.addf %27, %35 : vector<1x1xf32>
    %c0_28 = arith.constant 0 : index
    %c1_29 = arith.constant 1 : index
    %c1_30 = arith.constant 1 : index
    %c0_31 = arith.constant 0 : index
    %37 = vector.load %arg1[%c0_28, %c1_29, %c1_30, %c0_31] : memref<1x3x3x128xf32, #tpu.memory_space<vmem>>, vector<1x1x1x128xf32>
    %38 = vector.shape_cast %37 : vector<1x1x1x128xf32> to vector<1x1x128xf32>
    %39 = vector.shape_cast %38 : vector<1x1x128xf32> to vector<1x128xf32>
    %c4 = arith.constant 4 : index
    %c0_32 = arith.constant 0 : index
    %c0_33 = arith.constant 0 : index
    %40 = vector.load %arg2[%c4, %c0_32, %c0_33] : memref<9x1x128xf32, #tpu.memory_space<vmem>>, vector<1x1x128xf32>
    %41 = vector.shape_cast %40 : vector<1x1x128xf32> to vector<1x128xf32>
    %42 = arith.mulf %39, %41 : vector<1x128xf32>
    %cst_34 = arith.constant dense<0.000000e+00> : vector<1xf32>
    %43 = vector.multi_reduction <add>, %42, %cst_34 [1] : vector<1x128xf32> to vector<1xf32>
    %44 = vector.shape_cast %43 : vector<1xf32> to vector<1x1xf32>
    %45 = arith.addf %36, %44 : vector<1x1xf32>
    %c0_35 = arith.constant 0 : index
    %c1_36 = arith.constant 1 : index
    %c2_37 = arith.constant 2 : index
    %c0_38 = arith.constant 0 : index
    %46 = vector.load %arg1[%c0_35, %c1_36, %c2_37, %c0_38] : memref<1x3x3x128xf32, #tpu.memory_space<vmem>>, vector<1x1x1x128xf32>
    %47 = vector.shape_cast %46 : vector<1x1x1x128xf32> to vector<1x1x128xf32>
    %48 = vector.shape_cast %47 : vector<1x1x128xf32> to vector<1x128xf32>
    %c5 = arith.constant 5 : index
    %c0_39 = arith.constant 0 : index
    %c0_40 = arith.constant 0 : index
    %49 = vector.load %arg2[%c5, %c0_39, %c0_40] : memref<9x1x128xf32, #tpu.memory_space<vmem>>, vector<1x1x128xf32>
    %50 = vector.shape_cast %49 : vector<1x1x128xf32> to vector<1x128xf32>
    %51 = arith.mulf %48, %50 : vector<1x128xf32>
    %cst_41 = arith.constant dense<0.000000e+00> : vector<1xf32>
    %52 = vector.multi_reduction <add>, %51, %cst_41 [1] : vector<1x128xf32> to vector<1xf32>
    %53 = vector.shape_cast %52 : vector<1xf32> to vector<1x1xf32>
    %54 = arith.addf %45, %53 : vector<1x1xf32>
    %c0_42 = arith.constant 0 : index
    %c2_43 = arith.constant 2 : index
    %c0_44 = arith.constant 0 : index
    %c0_45 = arith.constant 0 : index
    %55 = vector.load %arg1[%c0_42, %c2_43, %c0_44, %c0_45] : memref<1x3x3x128xf32, #tpu.memory_space<vmem>>, vector<1x1x1x128xf32>
    %56 = vector.shape_cast %55 : vector<1x1x1x128xf32> to vector<1x1x128xf32>
    %57 = vector.shape_cast %56 : vector<1x1x128xf32> to vector<1x128xf32>
    %c6 = arith.constant 6 : index
    %c0_46 = arith.constant 0 : index
    %c0_47 = arith.constant 0 : index
    %58 = vector.load %arg2[%c6, %c0_46, %c0_47] : memref<9x1x128xf32, #tpu.memory_space<vmem>>, vector<1x1x128xf32>
    %59 = vector.shape_cast %58 : vector<1x1x128xf32> to vector<1x128xf32>
    %60 = arith.mulf %57, %59 : vector<1x128xf32>
    %cst_48 = arith.constant dense<0.000000e+00> : vector<1xf32>
    %61 = vector.multi_reduction <add>, %60, %cst_48 [1] : vector<1x128xf32> to vector<1xf32>
    %62 = vector.shape_cast %61 : vector<1xf32> to vector<1x1xf32>
    %63 = arith.addf %54, %62 : vector<1x1xf32>
    %c0_49 = arith.constant 0 : index
    %c2_50 = arith.constant 2 : index
    %c1_51 = arith.constant 1 : index
    %c0_52 = arith.constant 0 : index
    %64 = vector.load %arg1[%c0_49, %c2_50, %c1_51, %c0_52] : memref<1x3x3x128xf32, #tpu.memory_space<vmem>>, vector<1x1x1x128xf32>
    %65 = vector.shape_cast %64 : vector<1x1x1x128xf32> to vector<1x1x128xf32>
    %66 = vector.shape_cast %65 : vector<1x1x128xf32> to vector<1x128xf32>
    %c7 = arith.constant 7 : index
    %c0_53 = arith.constant 0 : index
    %c0_54 = arith.constant 0 : index
    %67 = vector.load %arg2[%c7, %c0_53, %c0_54] : memref<9x1x128xf32, #tpu.memory_space<vmem>>, vector<1x1x128xf32>
    %68 = vector.shape_cast %67 : vector<1x1x128xf32> to vector<1x128xf32>
    %69 = arith.mulf %66, %68 : vector<1x128xf32>
    %cst_55 = arith.constant dense<0.000000e+00> : vector<1xf32>
    %70 = vector.multi_reduction <add>, %69, %cst_55 [1] : vector<1x128xf32> to vector<1xf32>
    %71 = vector.shape_cast %70 : vector<1xf32> to vector<1x1xf32>
    %72 = arith.addf %63, %71 : vector<1x1xf32>
    %c0_56 = arith.constant 0 : index
    %c2_57 = arith.constant 2 : index
    %c2_58 = arith.constant 2 : index
    %c0_59 = arith.constant 0 : index
    %73 = vector.load %arg1[%c0_56, %c2_57, %c2_58, %c0_59] : memref<1x3x3x128xf32, #tpu.memory_space<vmem>>, vector<1x1x1x128xf32>
    %74 = vector.shape_cast %73 : vector<1x1x1x128xf32> to vector<1x1x128xf32>
    %75 = vector.shape_cast %74 : vector<1x1x128xf32> to vector<1x128xf32>
    %c8 = arith.constant 8 : index
    %c0_60 = arith.constant 0 : index
    %c0_61 = arith.constant 0 : index
    %76 = vector.load %arg2[%c8, %c0_60, %c0_61] : memref<9x1x128xf32, #tpu.memory_space<vmem>>, vector<1x1x128xf32>
    %77 = vector.shape_cast %76 : vector<1x1x128xf32> to vector<1x128xf32>
    %78 = arith.mulf %75, %77 : vector<1x128xf32>
    %cst_62 = arith.constant dense<0.000000e+00> : vector<1xf32>
    %79 = vector.multi_reduction <add>, %78, %cst_62 [1] : vector<1x128xf32> to vector<1xf32>
    %80 = vector.shape_cast %79 : vector<1xf32> to vector<1x1xf32>
    %81 = arith.addf %72, %80 : vector<1x1xf32>
    %c0_63 = arith.constant 0 : index
    %c0_64 = arith.constant 0 : index
    %82 = vector.load %arg3[%c0_63, %c0_64] : memref<1x1xf32, #tpu.memory_space<vmem>>, vector<1x1xf32>
    %83 = arith.addf %81, %82 : vector<1x1xf32>
    %84 = vector.shape_cast %83 : vector<1x1xf32> to vector<1x1x1xf32>
    %c0_65 = arith.constant 0 : index
    %c0_66 = arith.constant 0 : index
    %c0_67 = arith.constant 0 : index
    %85 = vector.load %arg4[%c0_65, %c0_66, %c0_67] : memref<1x1x1xf32, #tpu.memory_space<vmem>>, vector<1x1x1xf32>
    tpu.vector_store %arg4[%c0_65, %c0_66, %c0_67], %84 {strides = array<i32>} : memref<1x1x1xf32, #tpu.memory_space<vmem>>, vector<1x1x1xf32>,
    return
  }
  func.func @transform_0(%arg0: i32) -> (i32, i32, i32, i32) {
    %c0_i32 = arith.constant 0 : i32
    %c0_i32_0 = arith.constant 0 : i32
    %c0_i32_1 = arith.constant 0 : i32
    %c0_i32_2 = arith.constant 0 : i32
    return %arg0, %c0_i32, %c0_i32_0, %c0_i32_1 : i32, i32, i32, i32
  }
  func.func @transform_1(%arg0: i32) -> (i32, i32, i32) {
    %c0_i32 = arith.constant 0 : i32
    %c0_i32_0 = arith.constant 0 : i32
    %c0_i32_1 = arith.constant 0 : i32
    %c0_i32_2 = arith.constant 0 : i32
    return %c0_i32, %c0_i32_0, %c0_i32_1 : i32, i32, i32
  }
  func.func @transform_2(%arg0: i32) -> (i32, i32) {
    %c0_i32 = arith.constant 0 : i32
    %c0_i32_0 = arith.constant 0 : i32
    %c0_i32_1 = arith.constant 0 : i32
    return %c0_i32, %c0_i32_0 : i32, i32
  }
  func.func @transform_3(%arg0: i32) -> (i32, i32, i32) {
    %c0_i32 = arith.constant 0 : i32
    %c0_i32_0 = arith.constant 0 : i32
    %c0_i32_1 = arith.constant 0 : i32
    return %arg0, %c0_i32, %c0_i32_0 : i32, i32, i32
  }
}

</mosaic_0001>

<bundles_post_ra>
// kernel: patchgan_forward.5
= control target key start
LH: loop header
LB: loop body
LE: loop exit
PB: predicated region body
PF: predicated region fallthrough
CT: control target
= control target key end

     0   :  { %s1080_s12 = smov 0   ;;  %s1266_s0 = inlined_call_operand.vmem [shape: f32[2,9,2,9,6], index: 0, kind: input, shape index: {}]   ;;  %s1267_s1 = inlined_call_operand.vmem [shape: bf16[6,6,16], index: 1, kind: input, shape index: {}]   ;;  %s1268_s2 = inlined_call_operand.vmem [shape: f32[1,16], index: 2, kind: input, shape index: {}]   ;;  %s1269_s3 = inlined_call_operand.vmem [shape: f32[2,64,16], index: 3, kind: output, shape index: {}]  }
   0x1 LB: > { %s874_s13 = sadd.s32 4294967295, %s1058_s12   ;;  %p878_p0 = scmp.ge.s32.totalorder %s1058_s12, 1  ;;  %s1058_s12 = sphi %s1080_s12, %s13_s12  }
   0x2   : > { %p137_p1 = scmp.lt.s32.totalorder %s1058_s12, 3 }
   0x4   : > { %p138_p2 = pnand %p878_p0, %p137_p1 }
   0x5   : > { %p161_p3 = scmp.lt.s32.totalorder (!%p138_p2), %s874_s13, 1 }
   0x6   : > { %141 = sbr.rel (%p138_p2) target bundleno = 273 (0x111), region = 32 }
   0xb   : > { %v882_v0 = vld [vmem:[%s1267_s1 + $0x4] sm:$0x7]  ;;  %vm212_vm0 = vcmask 1042432   ;;  %v184_v1 = vld [vmem:[%s1267_s1] sm:$0x7]  ;;  %s1271_s13 = smov (!%p161_p3, %s874_s13), 1 }
   0xc   : > { %1037 = vmatprep.subr.msk.bf16.mxu0 %vm212_vm0, %v882_v0  ;;  %v214_v2 = vsel %vm212_vm0, %v882_v0, 0  ;;  %1038 = vmatprep.subr.msk.bf16.mxu1 %vm212_vm0, %v184_v1  ;;  %v294_v3 = vsel %vm212_vm0, %v184_v1, 0  ;;  %v899_v4 = vld [vmem:[%s1267_s1 + $0x8] sm:$0x7]  ;;  %v912_v5 = vld [vmem:[%s1267_s1 + $0xc] sm:$0x7] }
   0xd   : > { %978 = vmatpush3.bf16.msra.mxu0 %v214_v2  ;;  %988 = vmatpush3.bf16.msra.mxu1 %v294_v3  ;;  %s1043_s22 = smul.u32 288, %s1271_s13  ;;  %vm199_vm1 = vcmask 48128   ;;  %v389_v17 = vsel %vm212_vm0, %v899_v4, 0  ;;  %v491_v20 = vsel %vm212_vm0, %v912_v5, 0  ;;  %v925_v26 = vld [vmem:[%s1267_s1 + $0x10] sm:$0x7] }
   0xe   : > { %1039 = vmatprep.subr.msk.bf16.mxu0 %vm212_vm0, %v899_v4  ;;  %1040 = vmatprep.subr.msk.bf16.mxu1 %vm212_vm0, %v912_v5  ;;  %v938_v27 = vld [vmem:[%s1267_s1 + $0x14] sm:$0x7]  ;;  %v594_v50 = vsel %vm212_vm0, %v925_v26, 0  ;;  %s946_s5 = sshll.u32 %s1271_s13, 6  ;;  %vm810_vm2 = vcmask 130048  }
   0xf   : > { %s1112_s25 = scalar_lea.vmem %s1266_s0, %s1043_s22  ;;  %v696_v52 = vsel %vm212_vm0, %v938_v27, 0  ;;  %s1238_s8 = scalar_lea.vmem %s1269_s3, %s946_s5 }
  0x10   : > { %v185_v6 = vld [vmem:[%s1112_s25 + $0x1] sm:$0xff]  ;;  %v891_v32 = vld [vmem:[%s1112_s25 + $0x10] sm:$0xff] }
  0x11   : > { %v1116_v7 = vld [vmem:[%s1112_s25 + $0x21] sm:$0xff]  ;;  %v892_v33 = vld [vmem:[%s1112_s25 + $0x30] sm:$0xff] }
  0x12   : > { %v172_v8 = vld [vmem:[%s1112_s25] sm:$0xff]  ;;  %v193_v9 = vpack.c.bf16 %v1116_v7, %v185_v6  ;;  %v904_v34 = vld [vmem:[%s1112_s25 + $0x11] sm:$0xff]  ;;  %v370_v38 = vpack.c.bf16 %v892_v33, %v891_v32 }
  0x13   : > { %v1121_v10 = vld [vmem:[%s1112_s25 + $0x20] sm:$0xff]  ;;  %v905_v35 = vld [vmem:[%s1112_s25 + $0x31] sm:$0xff] }
  0x14   : > { %v1124_v11 = vld [vmem:[%s1112_s25 + $0x41] sm:$0xff]  ;;  %v180_v13 = vpack.c.bf16 %v1121_v10, %v172_v8  ;;  %979 = vmatprep.mubr.msk.bf16.mxu0 %vm199_vm1, %v193_v9  ;;  %v472_v39 = vpack.c.bf16 %v905_v35, %v904_v34  ;;  %v893_v40 = vld [vmem:[%s1112_s25 + $0x50] sm:$0xff] }
  0x15   : > { %v1127_v12 = vld [vmem:[%s1112_s25 + $0x61] sm:$0xff]  ;;  %v894_v41 = vld [vmem:[%s1112_s25 + $0x70] sm:$0xff]  ;;  %v677_v61 = vpack.c.bf16 %v1124_v11, %v1116_v7 }
  0x16   : > { %v194_v14 = vpack.c.bf16 %v1127_v12, %v1124_v11  ;;  %v1133_v15 = vld [vmem:[%s1112_s25 + $0x40] sm:$0xff]  ;;  %989 = vmatprep.mubr.msk.bf16.mxu1 %vm199_vm1, %v180_v13  ;;  %v906_v42 = vld [vmem:[%s1112_s25 + $0x51] sm:$0xff]  ;;  %v371_v46 = vpack.c.bf16 %v894_v41, %v893_v40 }
  0x17   : > { %v1136_v16 = vld [vmem:[%s1112_s25 + $0x60] sm:$0xff]  ;;  %v907_v43 = vld [vmem:[%s1112_s25 + $0x71] sm:$0xff]  ;;  %v575_v60 = vpack.c.bf16 %v1133_v15, %v1121_v10 }
  0x18   : > { %v1140_v18 = vld [vmem:[%s1112_s25 + $0x81] sm:$0xff]  ;;  %v181_v19 = vpack.c.bf16 %v1136_v16, %v1133_v15  ;;  %980 = vmatmul.mubr.msk.bf16.vlgmr.msra.gmra.mxu0 %vm199_vm1, %v194_v14  ;;  %v895_v44 = vld [vmem:[%s1112_s25 + $0x90] sm:$0xff]  ;;  %v473_v49 = vpack.c.bf16 %v907_v43, %v906_v42 }
  0x19   : > { %v1147_v21 = vld [vmem:[%s1112_s25 + $0xa1] sm:$0xff]  ;;  %998 = vmatpush3.bf16.msra.mxu0 %v389_v17  ;;  %v896_v45 = vld [vmem:[%s1112_s25 + $0xb0] sm:$0xff]  ;;  %v678_v63 = vpack.c.bf16 %v1140_v18, %v1127_v12 }
  0x1a   : > { %v1150_v22 = vld [vmem:[%s1112_s25 + $0x80] sm:$0xff]  ;;  %v195_v24 = vpack.c.bf16 %v1147_v21, %v1140_v18  ;;  %990 = vmatmul.mubr.msk.bf16.vlgmr.msra.gmra.mxu1 %vm199_vm1, %v181_v19  ;;  %1041 = vmatprep.subr.msk.bf16.mxu0 %vm212_vm0, %v925_v26  ;;  %v908_v47 = vld [vmem:[%s1112_s25 + $0x91] sm:$0xff]  ;;  %v372_v51 = vpack.c.bf16 %v896_v45, %v895_v44 }
  0x1b   : > { %v1153_v23 = vld [vmem:[%s1112_s25 + $0xa0] sm:$0xff]  ;;  %1008 = vmatpush3.bf16.msra.mxu1 %v491_v20  ;;  %v909_v48 = vld [vmem:[%s1112_s25 + $0xb1] sm:$0xff]  ;;  %v576_v62 = vpack.c.bf16 %v1150_v22, %v1136_v16 }
  0x1c   : > { %v182_v25 = vpack.c.bf16 %v1153_v23, %v1150_v22  ;;  %v191_v28 = vld [vmem:[%s1112_s25 + $0xc1] sm:$0xff]  ;;  %983 = vmatprep.mubr.msk.bf16.mxu0 %vm199_vm1, %v195_v24  ;;  %1042 = vmatprep.subr.msk.bf16.mxu1 %vm212_vm0, %v938_v27  ;;  %v474_v53 = vpack.c.bf16 %v909_v48, %v908_v47  ;;  %v897_v54 = vld [vmem:[%s1112_s25 + $0xd0] sm:$0xff] }
  0x1d   : > { %v1170_v29 = vld [vmem:[%s1112_s25 + $0xe1] sm:$0xff]  ;;  %v898_v55 = vld [vmem:[%s1112_s25 + $0xf0] sm:$0xff]  ;;  %v679_v1 = vpack.c.bf16 %v191_v28, %v1147_v21 }
  0x1e   : > { %v178_v30 = vld [vmem:[%s1112_s25 + $0xc0] sm:$0xff]  ;;  %993 = vmatprep.mubr.msk.bf16.mxu1 %vm199_vm1, %v182_v25  ;;  %v196_v36 = vpack.c.bf16 %v1170_v29, %v191_v28  ;;  %v910_v56 = vld [vmem:[%s1112_s25 + $0xd1] sm:$0xff]  ;;  %v373_v58 = vpack.c.bf16 %v898_v55, %v897_v54 }
  0x1f   : > { %v179_v31 = vld [vmem:[%s1112_s25 + $0xe0] sm:$0xff]  ;;  %v911_v57 = vld [vmem:[%s1112_s25 + $0xf1] sm:$0xff]  ;;  %v577_v0 = vpack.c.bf16 %v178_v30, %v1153_v23 }
  0x20   : > { %v183_v37 = vpack.c.bf16 %v179_v31, %v178_v30  ;;  %984 = vmatmul.mubr.msk.bf16.gmra.mxu0 %vm199_vm1, %v196_v36  ;;  %v475_v59 = vpack.c.bf16 %v911_v57, %v910_v56  ;;  %v924_v2 = vld [vmem:[%s1112_s25 + $0x100] sm:$0xff] }
  0x21   : > { %999 = vmatprep.mubr.msk.bf16.mxu0 %vm199_vm1, %v370_v38  ;;  %v937_v3 = vld [vmem:[%s1112_s25 + $0x101] sm:$0xff]  ;;  %v578_v4 = vpack.c.bf16 %v924_v2, %v179_v31 }
  0x22   : > { %994 = vmatmul.mubr.msk.bf16.gmra.mxu1 %vm199_vm1, %v183_v37  ;;  %v680_v5 = vpack.c.bf16 %v937_v3, %v1170_v29 }
  0x23   : > { %1009 = vmatprep.mubr.msk.bf16.mxu1 %vm199_vm1, %v472_v39 }
  0x28   : > { %1000 = vmatmul.mubr.msk.bf16.vlgmr.msra.gmra.mxu0 %vm199_vm1, %v371_v46 }
  0x29   : > { %1018 = vmatpush3.bf16.msra.mxu0 %v594_v50  ;;  %1003 = vmatprep.mubr.msk.bf16.mxu0 %vm199_vm1, %v372_v51 }
  0x2a   : > { %1010 = vmatmul.mubr.msk.bf16.vlgmr.msra.gmra.mxu1 %vm199_vm1, %v473_v49 }
  0x2b   : > { %1028 = vmatpush3.bf16.msra.mxu1 %v696_v52  ;;  %1013 = vmatprep.mubr.msk.bf16.mxu1 %vm199_vm1, %v474_v53  ;;  %v1231_v53 = vld [vmem:[%s1268_s2] ss:$0 sm:$0xff] }
  0x30   : > { %1004 = vmatmul.mubr.msk.bf16.gmra.mxu0 %vm199_vm1, %v373_v58 }
  0x31   : > { %1019 = vmatprep.mubr.msk.bf16.mxu0 %vm199_vm1, %v575_v60 }
  0x32   : > { %1014 = vmatmul.mubr.msk.bf16.gmra.mxu1 %vm199_vm1, %v475_v59 }
  0x33   : > { %1029 = vmatprep.mubr.msk.bf16.mxu1 %vm199_vm1, %v677_v61 }
  0x38   : > { %1020 = vmatmul.mubr.msk.bf16.vlgmr.msra.gmra.mxu0 %vm199_vm1, %v576_v62 }
  0x39   : > { %1023 = vmatprep.mubr.msk.bf16.mxu0 %vm199_vm1, %v577_v0 }
  0x3a   : > { %1030 = vmatmul.mubr.msk.bf16.vlgmr.msra.gmra.mxu1 %vm199_vm1, %v678_v63 }
  0x3b   : > { %1033 = vmatprep.mubr.msk.bf16.mxu1 %vm199_vm1, %v679_v1 }
  0x40   : > { %1024 = vmatmul.mubr.msk.bf16.gmra.mxu0 %vm199_vm1, %v578_v4 }
  0x42   : > { %1034 = vmatmul.mubr.msk.bf16.gmra.mxu1 %vm199_vm1, %v680_v5 }
  0xd8   : > { %v981_v6 = vpop.f32.mrf.mxu0 }
  0xda   : > { %v991_v7 = vpop.f32.mrf.mxu1  ;;  %v250_v8 = vpop.f32.mrf.mxu0 }
  0xdb   : > { %v339_v31 = vadd.f32 %v991_v7, %v981_v6 }
  0xdc   : > { %v330_v9 = vpop.f32.mrf.mxu1  ;;  %v982_v10 = vpop.f32.mrf.mxu0 }
  0xdd   : > { %v331_v34 = vadd.f32 %v330_v9, %v250_v8 }
  0xde   : > { %v992_v11 = vpop.f32.mrf.mxu1  ;;  %v253_v12 = vpop.f32.mrf.mxu0 }
  0xdf   : > { %v342_v38 = vadd.f32 %v992_v11, %v982_v10 }
  0xe0   : > { %v333_v13 = vpop.f32.mrf.mxu1  ;;  %v985_v14 = vpop.f32.mrf.mxu0 }
  0xe1   : > { %v334_v45 = vadd.f32 %v333_v13, %v253_v12 }
  0xe2   : > { %v995_v15 = vpop.f32.mrf.mxu1  ;;  %v266_v16 = vpop.f32.mrf.mxu0 }
  0xe3   : > { %v355_v50 = vadd.f32 %v995_v15, %v985_v14 }
  0xe4   : > { %v346_v17 = vpop.f32.mrf.mxu1  ;;  %v986_v18 = vpop.f32.mrf.mxu0 }
  0xe5   : > { %v347_v51 = vadd.f32 %v346_v17, %v266_v16 }
  0xe6   : > { %v996_v19 = vpop.f32.mrf.mxu1  ;;  %v269_v20 = vpop.f32.mrf.mxu0 }
  0xe7   : > { %v358_v59 = vadd.f32 %v996_v19, %v986_v18 }
  0xe8   : > { %v349_v21 = vpop.f32.mrf.mxu1  ;;  %v1001_v22 = vpop.f32.mrf.mxu0 }
  0xe9   : > { %v458_v35 = vadd.f32 %v1001_v22, %v339_v31  ;;  %v350_v3 = vadd.f32 %v349_v21, %v269_v20 }
  0xea   : > { %v1011_v23 = vpop.f32.mrf.mxu1  ;;  %v425_v24 = vpop.f32.mrf.mxu0 }
  0xeb   : > { %v456_v39 = vadd.f32 %v425_v24, %v331_v34  ;;  %v560_v42 = vadd.f32 %v1011_v23, %v458_v35 }
  0xec   : > { %v527_v25 = vpop.f32.mrf.mxu1  ;;  %v1002_v26 = vpop.f32.mrf.mxu0 }
  0xed   : > { %v459_v43 = vadd.f32 %v1002_v26, %v342_v38  ;;  %v558_v47 = vadd.f32 %v527_v25, %v456_v39 }
  0xee   : > { %v1012_v27 = vpop.f32.mrf.mxu1  ;;  %v428_v28 = vpop.f32.mrf.mxu0 }
  0xef   : > { %v457_v52 = vadd.f32 %v428_v28, %v334_v45  ;;  %v561_v55 = vadd.f32 %v1012_v27, %v459_v43 }
  0xf0   : > { %v530_v29 = vpop.f32.mrf.mxu1  ;;  %v1005_v30 = vpop.f32.mrf.mxu0 }
  0xf1   : > { %v462_v60 = vadd.f32 %v1005_v30, %v355_v50  ;;  %v559_v4 = vadd.f32 %v530_v29, %v457_v52 }
  0xf2   : > { %v1015_v32 = vpop.f32.mrf.mxu1  ;;  %v441_v33 = vpop.f32.mrf.mxu0 }
  0xf3   : > { %v460_v61 = vadd.f32 %v441_v33, %v347_v51  ;;  %v564_v11 = vadd.f32 %v1015_v32, %v462_v60 }
  0xf4   : > { %v543_v36 = vpop.f32.mrf.mxu1  ;;  %v1006_v37 = vpop.f32.mrf.mxu0 }
  0xf5   : > { %v463_v5 = vadd.f32 %v1006_v37, %v358_v59  ;;  %v562_v12 = vadd.f32 %v543_v36, %v460_v61 }
  0xf6   : > { %v1016_v40 = vpop.f32.mrf.mxu1  ;;  %v444_v41 = vpop.f32.mrf.mxu0 }
  0xf7   : > { %v461_v13 = vadd.f32 %v444_v41, %v350_v3  ;;  %v565_v20 = vadd.f32 %v1016_v40, %v463_v5 }
  0xf8   : > { %v546_v44 = vpop.f32.mrf.mxu1  ;;  %v1021_v46 = vpop.f32.mrf.mxu0 }
  0xf9   : > { %v663_v48 = vadd.f32 %v1021_v46, %v560_v42  ;;  %v563_v31 = vadd.f32 %v546_v44, %v461_v13 }
  0xfa   : > { %v1031_v49 = vpop.f32.mrf.mxu1  ;;  %v630_v54 = vpop.f32.mrf.mxu0 }
  0xfb   : > { %v765_v56 = vadd.f32 %v1031_v49, %v663_v48  ;;  %v661_v57 = vadd.f32 %v630_v54, %v558_v47 }
  0xfc   : > { %v732_v58 = vpop.f32.mrf.mxu1  ;;  %v1022_v62 = vpop.f32.mrf.mxu0 }
  0xfd   : > { %v780_v63 = vadd.f32 %v1231_v53, %v765_v56  ;;  %v763_v0 = vadd.f32 %v732_v58, %v661_v57  ;;  %v664_v1 = vadd.f32 %v1022_v62, %v561_v55 }
  0xfe   : > { %v1032_v2 = vpop.f32.mrf.mxu1  ;;  %v633_v6 = vpop.f32.mrf.mxu0 }
  0xff   : > { %vm788_vm3 = vcmp.ge.f32.partialorder %v780_v63, 0.0  ;;  %v796_v7 = vmul.f32 0.2, %v780_v63  ;;  %v778_v8 = vadd.f32 %v1231_v53, %v763_v0  ;;  %v766_v9 = vadd.f32 %v1032_v2, %v664_v1 }
 0x100   : > { %v735_v10 = vpop.f32.mrf.mxu1  ;;  %v662_v14 = vadd.f32 %v633_v6, %v559_v4  ;;  %v1025_v15 = vpop.f32.mrf.mxu0 }
 0x101   : > { %v804_v16 = vsel %vm788_vm3, %v780_v63, %v796_v7  ;;  %vm786_vm4 = vcmp.ge.f32.partialorder %v778_v8, 0.0  ;;  %v794_v17 = vmul.f32 0.2, %v778_v8  ;;  %v781_v18 = vadd.f32 %v1231_v53, %v766_v9 }
 0x102   : > { %v1035_v19 = vpop.f32.mrf.mxu1  ;;  %813 = vst.msk [vmem:[%s1238_s8 + $0x10] sm:$0xff] %vm810_vm2, %v804_v16  ;;  %v764_v21 = vadd.f32 %v735_v10, %v662_v14  ;;  %v667_v22 = vadd.f32 %v1025_v15, %v564_v11  ;;  %v646_v23 = vpop.f32.mrf.mxu0 }
 0x103   : > { %v802_v24 = vsel %vm786_vm4, %v778_v8, %v794_v17  ;;  %vm789_vm5 = vcmp.ge.f32.partialorder %v781_v18, 0.0  ;;  %v797_v25 = vmul.f32 0.2, %v781_v18  ;;  %v665_v26 = vadd.f32 %v646_v23, %v562_v12 }
 0x104   : > { %v748_v27 = vpop.f32.mrf.mxu1  ;;  %811 = vst.msk [vmem:[%s1238_s8] sm:$0xff] %vm810_vm2, %v802_v24  ;;  %v779_v28 = vadd.f32 %v1231_v53, %v764_v21  ;;  %v769_v29 = vadd.f32 %v1035_v19, %v667_v22  ;;  %v1026_v30 = vpop.f32.mrf.mxu0 }
 0x105   : > { %v805_v32 = vsel %vm789_vm5, %v781_v18, %v797_v25  ;;  %v767_v33 = vadd.f32 %v748_v27, %v665_v26  ;;  %v668_v34 = vadd.f32 %v1026_v30, %v565_v20 }
 0x106   : > { %v1036_v35 = vpop.f32.mrf.mxu1  ;;  %814 = vst.msk [vmem:[%s1238_s8 + $0x18] sm:$0xff] %vm810_vm2, %v805_v32  ;;  %vm787_vm6 = vcmp.ge.f32.partialorder %v779_v28, 0.0  ;;  %v795_v36 = vmul.f32 0.2, %v779_v28  ;;  %v784_v37 = vadd.f32 %v1231_v53, %v769_v29  ;;  %v649_v38 = vpop.f32.mrf.mxu0 }
 0x107   : > { %v782_v39 = vadd.f32 %v1231_v53, %v767_v33  ;;  %v770_v40 = vadd.f32 %v1036_v35, %v668_v34  ;;  %v666_v41 = vadd.f32 %v649_v38, %v563_v31 }
 0x108   : > { %v803_v42 = vsel %vm787_vm6, %v779_v28, %v795_v36  ;;  %vm792_vm7 = vcmp.ge.f32.partialorder %v784_v37, 0.0  ;;  %v800_v43 = vmul.f32 0.2, %v784_v37  ;;  %v751_v44 = vpop.f32.mrf.mxu1 }
 0x109   : > { %812 = vst.msk [vmem:[%s1238_s8 + $0x8] sm:$0xff] %vm810_vm2, %v803_v42  ;;  %vm790_vm8 = vcmp.ge.f32.partialorder %v782_v39, 0.0  ;;  %v798_v45 = vmul.f32 0.2, %v782_v39  ;;  %v785_v46 = vadd.f32 %v1231_v53, %v770_v40  ;;  %v768_v47 = vadd.f32 %v751_v44, %v666_v41 }
 0x10a   : > { %v808_v48 = vsel %vm792_vm7, %v784_v37, %v800_v43 }
 0x10b   : > { %817 = vst.msk [vmem:[%s1238_s8 + $0x30] sm:$0xff] %vm810_vm2, %v808_v48  ;;  %v806_v49 = vsel %vm790_vm8, %v782_v39, %v798_v45  ;;  %vm793_vm9 = vcmp.ge.f32.partialorder %v785_v46, 0.0  ;;  %v801_v50 = vmul.f32 0.2, %v785_v46  ;;  %v783_v51 = vadd.f32 %v1231_v53, %v768_v47 }
 0x10c   : > { %815 = vst.msk [vmem:[%s1238_s8 + $0x20] sm:$0xff] %vm810_vm2, %v806_v49 }
 0x10d   : > { %v809_v52 = vsel %vm793_vm9, %v785_v46, %v801_v50  ;;  %vm791_vm10 = vcmp.ge.f32.partialorder %v783_v51, 0.0  ;;  %v799_v54 = vmul.f32 0.2, %v783_v51 }
 0x10e   : > { %818 = vst.msk [vmem:[%s1238_s8 + $0x38] sm:$0xff] %vm810_vm2, %v809_v52 }
 0x10f   : > { %v807_v55 = vsel %vm791_vm10, %v783_v51, %v799_v54 }
 0x110   : > { %816 = vst.msk [vmem:[%s1238_s8 + $0x28] sm:$0xff] %vm810_vm2, %v807_v55 }
 0x111 PF: > { %s13_s12 = sadd.s32 1, %s1058_s12  }
 0x112   : > { %p10_p4 = scmp.ge.s32.totalorder %s13_s12, 4  }
 0x114   :  { %12 = sbr.rel (!%p10_p4) target bundleno = 1 (0x1), region = 69 }

// kernel: patchgan_forward.6
= control target key start
LH: loop header
LB: loop body
LE: loop exit
PB: predicated region body
PF: predicated region fallthrough
CT: control target
= control target key end

     0   :  { %s895_s12 = smov 0   ;;  %s1001_s0 = inlined_call_operand.vmem [shape: f32[2,5,2,5,32], index: 0, kind: input, shape index: {}]   ;;  %s1002_s1 = inlined_call_operand.vmem [shape: bf16[6,32,32], index: 1, kind: input, shape index: {}]   ;;  %s1003_s2 = inlined_call_operand.vmem [shape: f32[1,32], index: 2, kind: input, shape index: {}]   ;;  %s1004_s3 = inlined_call_operand.vmem [shape: f32[2,16,32], index: 3, kind: output, shape index: {}]  }
   0x1 LB: > { %s698_s13 = sadd.s32 4294967295, %s871_s12   ;;  %p702_p0 = scmp.ge.s32.totalorder %s871_s12, 1  ;;  %s871_s12 = sphi %s895_s12, %s13_s12  }
   0x2   : > { %p137_p1 = scmp.lt.s32.totalorder %s871_s12, 3 }
   0x4   : > { %p138_p2 = pnand %p702_p0, %p137_p1 }
   0x5   : > { %p161_p3 = scmp.lt.s32.totalorder (!%p138_p2), %s698_s13, 1 }
   0x6   : > { %141 = sbr.rel (%p138_p2) target bundleno = 243 (0xf3), region = 32 }
   0xb   : > { %v841_v0 = vld [vmem:[%s1002_s1 + $0x18] sm:$0xff]   ;;  %v873_v1 = vmov 0.0   ;;  %v842_v2 = vld [vmem:[%s1002_s1 + $0x8] sm:$0xff]   ;;  %v843_v3 = vld [vmem:[%s1002_s1 + $0x10] sm:$0xff]   ;;  %vm874_vm0 = vmmov 0   ;;  %s1006_s13 = smov (!%p161_p3, %s698_s13), 1 }
   0xc   : > { %782 = vmatprep.subr.bf16.mxu0 %v873_v1  ;;  %790 = vmatprep.subr.bf16.mxu1 %v873_v1  ;;  %v844_v4 = vld [vmem:[%s1002_s1] sm:$0xff]   ;;  %s830_s22 = smul.u32 80, %s1006_s13  ;;  %vm219_vm1 = vcmask 261120   ;;  %v849_v5 = vld [vmem:[%s1002_s1 + $0x28] sm:$0xff]   ;;  %v850_v8 = vld [vmem:[%s1002_s1 + $0x38] sm:$0xff]   ;;  %s763_s19 = sshll.u32 %s1006_s13, 4 }
   0xd   : > { %783 = vmatpush3.bf16.msra.mxu0 %v841_v0  ;;  %786 = vmatprep.mubr.msk.bf16.mxu0 %vm874_vm0, %v873_v1  ;;  %v851_v12 = vld [vmem:[%s1002_s1 + $0x20] sm:$0xff]   ;;  %v852_v18 = vld [vmem:[%s1002_s1 + $0x30] sm:$0xff]   ;;  %v857_v20 = vld [vmem:[%s1002_s1 + $0x48] sm:$0xff]  }
   0xe   : > { %791 = vmatpush3.bf16.msra.mxu1 %v842_v2  ;;  %784 = vmatprep.subr.bf16.mxu0 %v873_v1  ;;  %s930_s25 = scalar_lea.vmem %s1001_s0, %s830_s22  ;;  %v858_v21 = vld [vmem:[%s1002_s1 + $0x58] sm:$0xff]   ;;  %v859_v25 = vld [vmem:[%s1002_s1 + $0x40] sm:$0xff]   ;;  %v860_v28 = vld [vmem:[%s1002_s1 + $0x50] sm:$0xff]   ;;  %s170_s22 = scalar_lea.vmem %s1004_s3, %s763_s19 }
   0xf   : > { %792 = vmatprep.subr.bf16.mxu1 %v873_v1  ;;  %794 = vmatprep.mubr.msk.bf16.mxu1 %vm874_vm0, %v873_v1  ;;  %v845_v6 = vld [vmem:[%s930_s25 + $0x1] ss:$16 sps:$4 sm:$0xff]   ;;  %v853_v14 = vld [vmem:[%s930_s25 + $0x8] ss:$16 sps:$4 sm:$0xff]   ;;  %v760_v55 = vld [vmem:[%s1003_s2] ss:$0 sm:$0xff] }
  0x10   : > { %v846_v7 = vld [vmem:[%s930_s25 + $0x21] ss:$16 sps:$4 sm:$0xff]   ;;  %v854_v15 = vld [vmem:[%s930_s25 + $0x28] ss:$16 sps:$4 sm:$0xff]  }
  0x11   : > { %785 = vmatpush3.bf16.msra.mxu0 %v843_v3  ;;  %v201_v9 = vpack.c.bf16 %v846_v7, %v845_v6  ;;  %v847_v10 = vld [vmem:[%s930_s25] ss:$16 sps:$4 sm:$0xff]   ;;  %v855_v16 = vld [vmem:[%s930_s25 + $0x9] ss:$16 sps:$4 sm:$0xff]   ;;  %v333_v19 = vpack.c.bf16 %v854_v15, %v853_v14 }
  0x12   : > { %793 = vmatpush3.bf16.msra.mxu1 %v844_v4  ;;  %798 = vmatprep.subr.bf16.mxu0 %v873_v1  ;;  %v848_v11 = vld [vmem:[%s930_s25 + $0x20] ss:$16 sps:$4 sm:$0xff]   ;;  %v856_v17 = vld [vmem:[%s930_s25 + $0x29] ss:$16 sps:$4 sm:$0xff]  }
  0x13   : > { %806 = vmatprep.subr.bf16.mxu1 %v873_v1  ;;  %v184_v13 = vpack.c.bf16 %v848_v11, %v847_v10  ;;  %v409_v22 = vpack.c.bf16 %v856_v17, %v855_v16  ;;  %v861_v23 = vld [vmem:[%s930_s25 + $0x10] ss:$16 sps:$4 sm:$0xff]  }
  0x14   : > { %787 = vmatmul.mubr.msk.bf16.vlgmr.msra.gmra.mxu0 %vm219_vm1, %v201_v9  ;;  %v862_v24 = vld [vmem:[%s930_s25 + $0x30] ss:$16 sps:$4 sm:$0xff]  }
  0x15   : > { %799 = vmatpush3.bf16.msra.mxu0 %v849_v5  ;;  %802 = vmatprep.mubr.msk.bf16.mxu0 %vm874_vm0, %v873_v1  ;;  %v863_v26 = vld [vmem:[%s930_s25 + $0x11] ss:$16 sps:$4 sm:$0xff]   ;;  %v486_v29 = vpack.c.bf16 %v862_v24, %v861_v23 }
  0x16   : > { %795 = vmatmul.mubr.msk.bf16.vlgmr.msra.gmra.mxu1 %vm219_vm1, %v184_v13  ;;  %800 = vmatprep.subr.bf16.mxu0 %v873_v1  ;;  %v864_v27 = vld [vmem:[%s930_s25 + $0x31] ss:$16 sps:$4 sm:$0xff]  }
  0x17   : > { %807 = vmatpush3.bf16.msra.mxu1 %v850_v8  ;;  %810 = vmatprep.mubr.msk.bf16.mxu1 %vm874_vm0, %v873_v1  ;;  %v562_v30 = vpack.c.bf16 %v864_v27, %v863_v26 }
  0x18   : > { %808 = vmatprep.subr.bf16.mxu1 %v873_v1 }
  0x19   : > { %801 = vmatpush3.bf16.msra.mxu0 %v851_v12 }
  0x1a   : > { %814 = vmatprep.subr.bf16.mxu0 %v873_v1 }
  0x1b   : > { %809 = vmatpush3.bf16.msra.mxu1 %v852_v18 }
  0x1c   : > { %803 = vmatmul.mubr.msk.bf16.vlgmr.msra.gmra.mxu0 %vm219_vm1, %v333_v19  ;;  %822 = vmatprep.subr.bf16.mxu1 %v873_v1 }
  0x1d   : > { %815 = vmatpush3.bf16.msra.mxu0 %v857_v20  ;;  %818 = vmatprep.mubr.msk.bf16.mxu0 %vm874_vm0, %v873_v1 }
  0x1e   : > { %811 = vmatmul.mubr.msk.bf16.vlgmr.msra.gmra.mxu1 %vm219_vm1, %v409_v22  ;;  %816 = vmatprep.subr.bf16.mxu0 %v873_v1 }
  0x1f   : > { %823 = vmatpush3.bf16.msra.mxu1 %v858_v21  ;;  %826 = vmatprep.mubr.msk.bf16.mxu1 %vm874_vm0, %v873_v1 }
  0x20   : > { %824 = vmatprep.subr.bf16.mxu1 %v873_v1 }
  0x21   : > { %817 = vmatpush3.bf16.msra.mxu0 %v859_v25 }
  0x23   : > { %825 = vmatpush3.bf16.msra.mxu1 %v860_v28 }
  0x24   : > { %819 = vmatmul.mubr.msk.bf16.vlgmr.msra.gmra.mxu0 %vm219_vm1, %v486_v29 }
  0x26   : > { %827 = vmatmul.mubr.msk.bf16.vlgmr.msra.gmra.mxu1 %vm219_vm1, %v562_v30 }
  0xd4   : > { %v257_v31 = vpop.f32.mrf.mxu0 }
  0xd6   : > { %v313_v32 = vpop.f32.mrf.mxu1  ;;  %v788_v33 = vpop.f32.mrf.mxu0 }
  0xd7   : > { %v314_v40 = vadd.f32 %v313_v32, %v257_v31 }
  0xd8   : > { %v796_v34 = vpop.f32.mrf.mxu1  ;;  %v260_v35 = vpop.f32.mrf.mxu0 }
  0xda   : > { %v316_v36 = vpop.f32.mrf.mxu1  ;;  %v789_v37 = vpop.f32.mrf.mxu0 }
  0xdb   : > { %v317_v46 = vadd.f32 %v316_v36, %v260_v35 }
  0xdc   : > { %v797_v38 = vpop.f32.mrf.mxu1  ;;  %v388_v39 = vpop.f32.mrf.mxu0 }
  0xdd   : > { %v395_v43 = vadd.f32 %v388_v39, %v314_v40 }
  0xde   : > { %v464_v41 = vpop.f32.mrf.mxu1  ;;  %v804_v42 = vpop.f32.mrf.mxu0 }
  0xdf   : > { %v471_v49 = vadd.f32 %v464_v41, %v395_v43 }
  0xe0   : > { %v812_v44 = vpop.f32.mrf.mxu1  ;;  %v391_v45 = vpop.f32.mrf.mxu0 }
  0xe1   : > { %v396_v50 = vadd.f32 %v391_v45, %v317_v46 }
  0xe2   : > { %v467_v47 = vpop.f32.mrf.mxu1  ;;  %v805_v48 = vpop.f32.mrf.mxu0 }
  0xe3   : > { %v472_v57 = vadd.f32 %v467_v47, %v396_v50 }
  0xe4   : > { %v813_v51 = vpop.f32.mrf.mxu1  ;;  %v541_v52 = vpop.f32.mrf.mxu0 }
  0xe5   : > { %v548_v53 = vadd.f32 %v541_v52, %v471_v49 }
  0xe6   : > { %v617_v54 = vpop.f32.mrf.mxu1  ;;  %v820_v56 = vpop.f32.mrf.mxu0 }
  0xe7   : > { %v624_v58 = vadd.f32 %v617_v54, %v548_v53 }
  0xe8   : > { %v828_v59 = vpop.f32.mrf.mxu1  ;;  %v544_v60 = vpop.f32.mrf.mxu0 }
  0xe9   : > { %v633_v61 = vadd.f32 %v760_v55, %v624_v58  ;;  %v549_v62 = vadd.f32 %v544_v60, %v472_v57 }
  0xea   : > { %v620_v63 = vpop.f32.mrf.mxu1  ;;  %v821_v0 = vpop.f32.mrf.mxu0 }
  0xeb   : > { %vm635_vm2 = vcmp.ge.f32.partialorder %v633_v61, 0.0  ;;  %v637_v1 = vmul.f32 0.2, %v633_v61  ;;  %v625_v2 = vadd.f32 %v620_v63, %v549_v62 }
  0xec   : > { %v829_v3 = vpop.f32.mrf.mxu1 }
  0xed   : > { %v639_v4 = vsel %vm635_vm2, %v633_v61, %v637_v1  ;;  %v634_v5 = vadd.f32 %v760_v55, %v625_v2 }
  0xee   : > { %641 = vst.msk [vmem:[%s170_s22] sm:$0xff] %vm219_vm1, %v639_v4 }
  0xef   : > { %vm636_vm3 = vcmp.ge.f32.partialorder %v634_v5, 0.0  ;;  %v638_v6 = vmul.f32 0.2, %v634_v5 }
  0xf1   : > { %v640_v7 = vsel %vm636_vm3, %v634_v5, %v638_v6 }
  0xf2   : > { %642 = vst.msk [vmem:[%s170_s22 + $0x8] sm:$0xff] %vm219_vm1, %v640_v7 }
  0xf3 PF: > { %s13_s12 = sadd.s32 1, %s871_s12  }
  0xf4   : > { %p10_p4 = scmp.ge.s32.totalorder %s13_s12, 4  }
  0xf6   :  { %12 = sbr.rel (!%p10_p4) target bundleno = 1 (0x1), region = 69 }

// kernel: patchgan_forward.7
= control target key start
LH: loop header
LB: loop body
LE: loop exit
PB: predicated region body
PF: predicated region fallthrough
CT: control target
= control target key end

     0   :  { %s1045_s12 = smov 0   ;;  %s1199_s0 = inlined_call_operand.vmem [shape: f32[2,3,2,3,64], index: 0, kind: input, shape index: {}]   ;;  %s1200_s1 = inlined_call_operand.vmem [shape: bf16[6,64,64], index: 1, kind: input, shape index: {}]   ;;  %s1201_s2 = inlined_call_operand.vmem [shape: f32[1,64], index: 2, kind: input, shape index: {}]   ;;  %s1202_s3 = inlined_call_operand.vmem [shape: f32[2,4,64], index: 3, kind: output, shape index: {}]  }
   0x1 LB: > { %s782_s13 = sadd.s32 4294967295, %s1020_s12   ;;  %p786_p0 = scmp.ge.s32.totalorder %s1020_s12, 1  ;;  %s1020_s12 = sphi %s1045_s12, %s13_s12  }
   0x2   : > { %p137_p1 = scmp.lt.s32.totalorder %s1020_s12, 3 }
   0x4   : > { %p138_p2 = pnand %p786_p0, %p137_p1 }
   0x5   : > { %p160_p3 = scmp.lt.s32.totalorder (!%p138_p2), %s782_s13, 1 }
   0x6   : > { %141 = sbr.rel (%p138_p2) target bundleno = 263 (0x107), region = 32 }
   0xb   : > { %v984_v0 = vld [vmem:[%s1200_s1 + $0x38] sm:$0xff]   ;;  %v1022_v1 = vmov 0.0   ;;  %v986_v3 = vld [vmem:[%s1200_s1 + $0x30] sm:$0xff]   ;;  %vm1023_vm0 = vmmov 0   ;;  %v178_v5 = vlaneseq  ;;  %s1204_s13 = smov (!%p160_p3, %s782_s13), 1  ;;  %v988_v6 = vld [vmem:[%s1200_s1 + $0x28] sm:$0xff]  }
   0xc   : > { %900 = vmatprep.subr.bf16.mxu0 %v1022_v1  ;;  %912 = vmatprep.subr.bf16.mxu1 %v1022_v1  ;;  %v985_v2 = vld [vmem:[%s1200_s1 + $0x18] sm:$0xff]   ;;  %v987_v4 = vld [vmem:[%s1200_s1 + $0x10] sm:$0xff]   ;;  %s972_s24 = smul.u32 24, %s1204_s13  ;;  %v989_v7 = vld [vmem:[%s1200_s1 + $0x8] sm:$0xff]   ;;  %v1024_v9 = vmov 1983009808  }
   0xd   : > { %901 = vmatpush3.bf16.msra.mxu0 %v984_v0  ;;  %908 = vmatprep.mubr.msk.bf16.mxu0 %vm1023_vm0, %v1022_v1  ;;  %v179_v8 = vshrl.u32 %v178_v5, 7  ;;  %v176_v10 = vunpack.c.l.s4 %v1024_v9  ;;  %v990_v11 = vld [vmem:[%s1200_s1 + $0x20] sm:$0xff]   ;;  %v994_v19 = vld [vmem:[%s1200_s1 + $0x58] sm:$0xff]   ;;  %vm239_vm1 = vcmask 523264   ;;  %v996_v23 = vld [vmem:[%s1200_s1 + $0x50] sm:$0xff]   ;;  %s788_s18 = sshll.u32 %s1204_s13, 2 }
   0xe   : > { %913 = vmatpush3.bf16.msra.mxu1 %v985_v2  ;;  %902 = vmatprep.subr.bf16.mxu0 %v1022_v1  ;;  %s1087_s29 = scalar_lea.vmem %s1199_s0, %s972_s24  ;;  %v991_v13 = vld [vmem:[%s1200_s1] sm:$0xff]   ;;  %v995_v20 = vld [vmem:[%s1200_s1 + $0x78] sm:$0xff]   ;;  %v997_v24 = vld [vmem:[%s1200_s1 + $0x70] sm:$0xff]   ;;  %s168_s21 = scalar_lea.vmem %s1202_s3, %s788_s18  ;;  %vm727_vm3 = vcmask 519168  }
   0xf   : > { %914 = vmatprep.subr.bf16.mxu1 %v1022_v1  ;;  %920 = vmatprep.mubr.msk.bf16.mxu1 %vm1023_vm0, %v1022_v1  ;;  %v992_v12 = vld [vmem:[%s1087_s29 + $0x1] ss:$8 sps:$4 sm:$0x33]   ;;  %v177_v14 = vunpack.c.0.s8 %v176_v10  ;;  %v1002_v25 = vld [vmem:[%s1087_s29 + $0x4] ss:$8 sps:$4 sm:$0x33]  }
  0x10   : > { %v993_v15 = vld [vmem:[%s1087_s29] ss:$8 sps:$4 sm:$0x33]   ;;  %v1003_v26 = vld [vmem:[%s1087_s29 + $0x5] ss:$8 sps:$4 sm:$0x33]  }
  0x11   : > { %903 = vmatpush3.bf16.msra.mxu0 %v986_v3  ;;  %v1099_v16 = vsub.s32 %v177_v14, %v179_v8  ;;  %v998_v27 = vld [vmem:[%s1200_s1 + $0x48] sm:$0xff]   ;;  %v1000_v29 = vld [vmem:[%s1200_s1 + $0x40] sm:$0xff]   ;;  %v1004_v35 = vld [vmem:[%s1200_s1 + $0x98] sm:$0xff]  }
  0x12   : > { %915 = vmatpush3.bf16.msra.mxu1 %v987_v4  ;;  %904 = vmatprep.subr.bf16.mxu0 %v1022_v1  ;;  %v999_v28 = vld [vmem:[%s1200_s1 + $0x68] sm:$0xff]   ;;  %v1001_v32 = vld [vmem:[%s1200_s1 + $0x60] sm:$0xff]   ;;  %v1005_v36 = vld [vmem:[%s1200_s1 + $0xb8] sm:$0xff]  }
  0x13   : > { %916 = vmatprep.subr.bf16.mxu1 %v1022_v1  ;;  %v203_v17 = vrot.slane %v992_v12, %v1099_v16  ;;  %v181_v18 = vrot.slane %v993_v15, %v1099_v16  ;;  %v362_v30 = vrot.slane %v1002_v25, %v1099_v16  ;;  %v453_v31 = vrot.slane %v1003_v26, %v1099_v16  ;;  %v1006_v37 = vld [vmem:[%s1200_s1 + $0x90] sm:$0xff]   ;;  %v1008_v41 = vld [vmem:[%s1200_s1 + $0x88] sm:$0xff]   ;;  %v1010_v45 = vld [vmem:[%s1200_s1 + $0x80] sm:$0xff]  }
  0x14   : > { %v1007_v38 = vld [vmem:[%s1200_s1 + $0xb0] sm:$0xff]   ;;  %v1009_v42 = vld [vmem:[%s1200_s1 + $0xa8] sm:$0xff]   ;;  %v1011_v46 = vld [vmem:[%s1200_s1 + $0xa0] sm:$0xff]  }
  0x15   : > { %905 = vmatpush3.bf16.msra.mxu0 %v988_v6  ;;  %v205_v21 = vpack.c.bf16 %v203_v17, %v203_v17  ;;  %v183_v22 = vpack.c.bf16 %v181_v18, %v181_v18  ;;  %v364_v33 = vpack.c.bf16 %v362_v30, %v362_v30  ;;  %v455_v34 = vpack.c.bf16 %v453_v31, %v453_v31  ;;  %v1012_v39 = vld [vmem:[%s1087_s29 + $0x8] ss:$8 sps:$4 sm:$0x33]  }
  0x16   : > { %917 = vmatpush3.bf16.msra.mxu1 %v989_v7  ;;  %906 = vmatprep.subr.bf16.mxu0 %v1022_v1  ;;  %v1013_v40 = vld [vmem:[%s1087_s29 + $0x9] ss:$8 sps:$4 sm:$0x33]   ;;  %v545_v43 = vrot.slane %v1012_v39, %v1099_v16  ;;  %v867_v7 = vld [vmem:[%s1201_s2] ss:$0 sm:$0xff] }
  0x17   : > { %918 = vmatprep.subr.bf16.mxu1 %v1022_v1  ;;  %v636_v44 = vrot.slane %v1013_v40, %v1099_v16 }
  0x18   : > { %v547_v47 = vpack.c.bf16 %v545_v43, %v545_v43 }
  0x19   : > { %907 = vmatpush3.bf16.msra.mxu0 %v990_v11  ;;  %v638_v48 = vpack.c.bf16 %v636_v44, %v636_v44 }
  0x1a   : > { %919 = vmatpush3.bf16.msra.mxu1 %v991_v13  ;;  %924 = vmatprep.subr.bf16.mxu0 %v1022_v1 }
  0x1b   : > { %936 = vmatprep.subr.bf16.mxu1 %v1022_v1 }
  0x1c   : > { %909 = vmatmul.mubr.msk.bf16.vlgmr.msra.gmra.mxu0 %vm239_vm1, %v205_v21 }
  0x1d   : > { %921 = vmatmul.mubr.msk.bf16.vlgmr.msra.gmra.mxu1 %vm239_vm1, %v183_v22  ;;  %925 = vmatpush3.bf16.msra.mxu0 %v994_v19 }
  0x1e   : > { %937 = vmatpush3.bf16.msra.mxu1 %v995_v20  ;;  %926 = vmatprep.subr.bf16.mxu0 %v1022_v1 }
  0x1f   : > { %938 = vmatprep.subr.bf16.mxu1 %v1022_v1  ;;  %932 = vmatprep.mubr.msk.bf16.mxu0 %vm1023_vm0, %v1022_v1 }
  0x20   : > { %944 = vmatprep.mubr.msk.bf16.mxu1 %vm1023_vm0, %v1022_v1 }
  0x21   : > { %927 = vmatpush3.bf16.msra.mxu0 %v996_v23 }
  0x22   : > { %939 = vmatpush3.bf16.msra.mxu1 %v997_v24  ;;  %928 = vmatprep.subr.bf16.mxu0 %v1022_v1 }
  0x23   : > { %940 = vmatprep.subr.bf16.mxu1 %v1022_v1 }
  0x25   : > { %929 = vmatpush3.bf16.msra.mxu0 %v998_v27 }
  0x26   : > { %941 = vmatpush3.bf16.msra.mxu1 %v999_v28  ;;  %930 = vmatprep.subr.bf16.mxu0 %v1022_v1 }
  0x27   : > { %942 = vmatprep.subr.bf16.mxu1 %v1022_v1 }
  0x29   : > { %931 = vmatpush3.bf16.msra.mxu0 %v1000_v29 }
  0x2a   : > { %943 = vmatpush3.bf16.msra.mxu1 %v1001_v32  ;;  %948 = vmatprep.subr.bf16.mxu0 %v1022_v1 }
  0x2b   : > { %960 = vmatprep.subr.bf16.mxu1 %v1022_v1 }
  0x2c   : > { %933 = vmatmul.mubr.msk.bf16.vlgmr.msra.gmra.mxu0 %vm239_vm1, %v364_v33 }
  0x2d   : > { %945 = vmatmul.mubr.msk.bf16.vlgmr.msra.gmra.mxu1 %vm239_vm1, %v455_v34  ;;  %949 = vmatpush3.bf16.msra.mxu0 %v1004_v35 }
  0x2e   : > { %961 = vmatpush3.bf16.msra.mxu1 %v1005_v36  ;;  %950 = vmatprep.subr.bf16.mxu0 %v1022_v1 }
  0x2f   : > { %962 = vmatprep.subr.bf16.mxu1 %v1022_v1  ;;  %956 = vmatprep.mubr.msk.bf16.mxu0 %vm1023_vm0, %v1022_v1 }
  0x30   : > { %968 = vmatprep.mubr.msk.bf16.mxu1 %vm1023_vm0, %v1022_v1 }
  0x31   : > { %951 = vmatpush3.bf16.msra.mxu0 %v1006_v37 }
  0x32   : > { %963 = vmatpush3.bf16.msra.mxu1 %v1007_v38  ;;  %952 = vmatprep.subr.bf16.mxu0 %v1022_v1 }
  0x33   : > { %964 = vmatprep.subr.bf16.mxu1 %v1022_v1 }
  0x35   : > { %953 = vmatpush3.bf16.msra.mxu0 %v1008_v41 }
  0x36   : > { %965 = vmatpush3.bf16.msra.mxu1 %v1009_v42  ;;  %954 = vmatprep.subr.bf16.mxu0 %v1022_v1 }
  0x37   : > { %966 = vmatprep.subr.bf16.mxu1 %v1022_v1 }
  0x39   : > { %955 = vmatpush3.bf16.msra.mxu0 %v1010_v45 }
  0x3a   : > { %967 = vmatpush3.bf16.msra.mxu1 %v1011_v46 }
  0x3c   : > { %957 = vmatmul.mubr.msk.bf16.vlgmr.msra.gmra.mxu0 %vm239_vm1, %v547_v47 }
  0x3d   : > { %969 = vmatmul.mubr.msk.bf16.vlgmr.msra.gmra.mxu1 %vm239_vm1, %v638_v48 }
  0xdc   : > { %v277_v49 = vpop.f32.mrf.mxu0 }
  0xdd   : > { %v344_v50 = vpop.f32.mrf.mxu1 }
  0xde   : > { %v910_v51 = vpop.f32.mrf.mxu0  ;;  %v345_v1 = vadd.f32 %v344_v50, %v277_v49 }
  0xdf   : > { %v922_v52 = vpop.f32.mrf.mxu1 }
  0xe0   : > { %v280_v53 = vpop.f32.mrf.mxu0 }
  0xe1   : > { %v347_v54 = vpop.f32.mrf.mxu1 }
  0xe2   : > { %v911_v55 = vpop.f32.mrf.mxu0 }
  0xe3   : > { %v923_v56 = vpop.f32.mrf.mxu1 }
  0xec   : > { %v435_v57 = vpop.f32.mrf.mxu0 }
  0xed   : > { %v526_v58 = vpop.f32.mrf.mxu1  ;;  %v441_v2 = vadd.f32 %v435_v57, %v345_v1 }
  0xee   : > { %v934_v59 = vpop.f32.mrf.mxu0 }
  0xef   : > { %v946_v60 = vpop.f32.mrf.mxu1  ;;  %v532_v3 = vadd.f32 %v526_v58, %v441_v2 }
  0xf0   : > { %v438_v61 = vpop.f32.mrf.mxu0 }
  0xf1   : > { %v529_v62 = vpop.f32.mrf.mxu1 }
  0xf2   : > { %v935_v63 = vpop.f32.mrf.mxu0 }
  0xf3   : > { %v947_v0 = vpop.f32.mrf.mxu1 }
  0xfc   : > { %v618_v4 = vpop.f32.mrf.mxu0 }
  0xfd   : > { %v709_v5 = vpop.f32.mrf.mxu1  ;;  %v624_v6 = vadd.f32 %v618_v4, %v532_v3 }
  0xfe   : > { %v958_v8 = vpop.f32.mrf.mxu0 }
  0xff   : > { %v970_v9 = vpop.f32.mrf.mxu1  ;;  %v715_v10 = vadd.f32 %v709_v5, %v624_v6 }
 0x100   : > { %v621_v11 = vpop.f32.mrf.mxu0 }
 0x101   : > { %v712_v12 = vpop.f32.mrf.mxu1  ;;  %v723_v13 = vadd.f32 %v867_v7, %v715_v10 }
 0x102   : > { %v959_v14 = vpop.f32.mrf.mxu0 }
 0x103   : > { %v971_v15 = vpop.f32.mrf.mxu1  ;;  %vm724_vm2 = vcmp.ge.f32.partialorder %v723_v13, 0.0  ;;  %v725_v16 = vmul.f32 0.2, %v723_v13 }
 0x105   : > { %v726_v17 = vsel %vm724_vm2, %v723_v13, %v725_v16 }
 0x106   : > { %728 = vst.msk [vmem:[%s168_s21] sm:$0xf] %vm727_vm3, %v726_v17 }
 0x107 PF: > { %s13_s12 = sadd.s32 1, %s1020_s12  }
 0x108   : > { %p10_p4 = scmp.ge.s32.totalorder %s13_s12, 4  }
 0x10a   :  { %12 = sbr.rel (!%p10_p4) target bundleno = 1 (0x1), region = 69 }

// kernel: patchgan_forward.9
= control target key start
LH: loop header
LB: loop body
LE: loop exit
PB: predicated region body
PF: predicated region fallthrough
CT: control target
= control target key end

     0   :  { %s356_s14 = smov 0   ;;  %s424_s0 = inlined_call_operand.vmem [shape: f32[2,3,3,128], index: 0, kind: input, shape index: {}]   ;;  %s425_s1 = inlined_call_operand.vmem [shape: f32[9,1,128], index: 1, kind: input, shape index: {}]   ;;  %s426_s2 = inlined_call_operand.<no memory space> [shape: f32[1,1], index: 2, kind: input, shape index: {}]   ;;  %s427_s3 = inlined_call_operand.vmem [shape: f32[2,1,1], index: 3, kind: output, shape index: {}]  }
   0x1   :  { %v8_v0 = vstv %s426_s2 }
   0x2   :  { %9 = vst [vmem:[#allocation2] sm:$0x1] %v8_v0 }
   0x3 LB: > { %s294_s15 = sadd.s32 4294967295, %s331_s14   ;;  %p298_p0 = scmp.ge.s32.totalorder %s331_s14, 1  ;;  %s331_s14 = sphi %s356_s14, %s15_s14  }
   0x4   : > { %p139_p1 = scmp.lt.s32.totalorder %s331_s14, 3 }
   0x6   : > { %p140_p2 = pnand %p298_p0, %p139_p1 }
   0x7   : > { %p161_p3 = scmp.lt.s32.totalorder (!%p140_p2), %s294_s15, 1 }
   0x8   : > { %143 = sbr.rel (%p140_p2) target bundleno = 182 (0xb6), region = 32 }
   0xd   : > { %s429_s15 = smov (!%p161_p3, %s294_s15), 1  ;;  %v170_v1 = vld [vmem:[%s425_s1] sm:$0x1]  ;;  %v301_v2 = vld [vmem:[%s425_s1 + $0x2] sm:$0x1]  ;;  %vm172_vm0 = vcmask 1040384  }
   0xe   : > { %s316_s2 = smul.u32 12, %s429_s15  ;;  %v300_v3 = vld [vmem:[%s425_s1 + $0x1] sm:$0x1]  ;;  %v303_v4 = vld [vmem:[%s425_s1 + $0x3] sm:$0x1]  ;;  %s168_s12 = scalar_lea.vmem %s427_s3, %s429_s15  ;;  %vm245_vm1 = vcmask 0  }
   0xf   : > { %v305_v12 = vld [vmem:[%s425_s1 + $0x4] sm:$0x1]  ;;  %v307_v16 = vld [vmem:[%s425_s1 + $0x5] sm:$0x1]  ;;  %v309_v23 = vld [vmem:[%s425_s1 + $0x6] sm:$0x1] }
  0x10   : > { %s379_s24 = scalar_lea.vmem %s424_s0, %s316_s2  ;;  %v311_v26 = vld [vmem:[%s425_s1 + $0x7] sm:$0x1]  ;;  %v313_v32 = vld [vmem:[%s425_s1 + $0x8] sm:$0x1]  ;;  %v243_v53 = vld [vmem:[#allocation2] sm:$0x1] }
  0x11   : > { %v169_v5 = vld [vmem:[%s379_s24] sm:$0x1]  ;;  %v185_v6 = vld [vmem:[%s379_s24 + $0x2] sm:$0x1]  ;;  %v177_v7 = vld [vmem:[%s379_s24 + $0x1] sm:$0x1] }
  0x12   : > { %v171_v8 = vmul.f32 %v170_v1, %v169_v5  ;;  %v188_v9 = vmul.f32 %v301_v2, %v185_v6  ;;  %v180_v10 = vmul.f32 %v300_v3, %v177_v7  ;;  %v302_v11 = vld [vmem:[%s379_s24 + $0x4] sm:$0x1]  ;;  %v304_v14 = vld [vmem:[%s379_s24 + $0x5] sm:$0x1]  ;;  %v306_v15 = vld [vmem:[%s379_s24 + $0x6] sm:$0x1] }
  0x13   : > { %v197_v13 = vmul.f32 %v303_v4, %v302_v11  ;;  %v205_v21 = vmul.f32 %v305_v12, %v304_v14  ;;  %v213_v22 = vmul.f32 %v307_v16, %v306_v15  ;;  %v308_v24 = vld [vmem:[%s379_s24 + $0x8] sm:$0x1]  ;;  %v310_v25 = vld [vmem:[%s379_s24 + $0x9] sm:$0x1]  ;;  %v312_v31 = vld [vmem:[%s379_s24 + $0xa] sm:$0x1] }
  0x14   : > { %v173_v17 = vsel %vm172_vm0, %v171_v8, 0.0  ;;  %v189_v18 = vsel %vm172_vm0, %v188_v9, 0.0  ;;  %v181_v19 = vsel %vm172_vm0, %v180_v10, 0.0  ;;  %v222_v29 = vmul.f32 %v309_v23, %v308_v24 }
  0x15   : > { %174 = vadd.xlane.f32.xlu0 %v173_v17  ;;  %190 = vadd.xlane.f32.xlu1 %v189_v18  ;;  %v198_v20 = vsel %vm172_vm0, %v197_v13, 0.0  ;;  %v206_v27 = vsel %vm172_vm0, %v205_v21, 0.0  ;;  %v214_v28 = vsel %vm172_vm0, %v213_v22, 0.0  ;;  %v230_v30 = vmul.f32 %v311_v26, %v310_v25 }
  0x16   : > { %v223_v33 = vsel %vm172_vm0, %v222_v29, 0.0  ;;  %v238_v35 = vmul.f32 %v313_v32, %v312_v31 }
  0x17   : > { %v231_v34 = vsel %vm172_vm0, %v230_v30, 0.0 }
  0x18   : > { %v239_v36 = vsel %vm172_vm0, %v238_v35, 0.0 }
  0x19   : > { %182 = vadd.xlane.f32.xlu0 %v181_v19  ;;  %199 = vadd.xlane.f32.xlu1 %v198_v20 }
  0x1d   : > { %207 = vadd.xlane.f32.xlu0 %v206_v27  ;;  %215 = vadd.xlane.f32.xlu1 %v214_v28 }
  0x21   : > { %224 = vadd.xlane.f32.xlu0 %v223_v33  ;;  %232 = vadd.xlane.f32.xlu1 %v231_v34 }
  0x25   : > { %240 = vadd.xlane.f32.xlu0 %v239_v36 }
  0x9e   : > { %v175_v37 = vpop.xlane.xlu0 %174  ;;  %v191_v38 = vpop.xlane.xlu1 %190 }
  0xa2   : > { %v183_v39 = vpop.xlane.xlu0 %182  ;;  %v200_v40 = vpop.xlane.xlu1 %199 }
  0xa3   : > { %v184_v41 = vadd.f32 %v183_v39, %v175_v37 }
  0xa5   : > { %v192_v42 = vadd.f32 %v191_v38, %v184_v41 }
  0xa6   : > { %v208_v43 = vpop.xlane.xlu0 %207  ;;  %v216_v44 = vpop.xlane.xlu1 %215 }
  0xa7   : > { %v201_v45 = vadd.f32 %v200_v40, %v192_v42 }
  0xa9   : > { %v209_v46 = vadd.f32 %v208_v43, %v201_v45 }
  0xaa   : > { %v225_v47 = vpop.xlane.xlu0 %224  ;;  %v233_v49 = vpop.xlane.xlu1 %232 }
  0xab   : > { %v217_v48 = vadd.f32 %v216_v44, %v209_v46 }
  0xad   : > { %v226_v50 = vadd.f32 %v225_v47, %v217_v48 }
  0xae   : > { %v241_v51 = vpop.xlane.xlu0 %240 }
  0xaf   : > { %v234_v52 = vadd.f32 %v233_v49, %v226_v50 }
  0xb1   : > { %v242_v54 = vadd.f32 %v241_v51, %v234_v52 }
  0xb3   : > { %v244_v55 = vadd.f32 %v243_v53, %v242_v54 }
  0xb5   : > { %246 = vst.msk [vmem:[%s168_s12] sm:$0x1] %vm245_vm1, %v244_v55 }
  0xb6 PF: > { %s15_s14 = sadd.s32 1, %s331_s14  }
  0xb7   : > { %p12_p4 = scmp.ge.s32.totalorder %s15_s14, 4  }
  0xb9   :  { %14 = sbr.rel (!%p12_p4) target bundleno = 3 (0x3), region = 72 }

// kernel: patchgan_forward.8
= control target key start
LH: loop header
LB: loop body
LE: loop exit
PB: predicated region body
PF: predicated region fallthrough
CT: control target
= control target key end

     0   :  { %s1272_s12 = smov 0   ;;  %s1512_s0 = inlined_call_operand.vmem [shape: f32[2,2,2,2,128], index: 0, kind: input, shape index: {}]   ;;  %s1513_s1 = inlined_call_operand.vmem [shape: bf16[6,128,128], index: 1, kind: input, shape index: {}]   ;;  %s1514_s2 = inlined_call_operand.vmem [shape: f32[1,128], index: 2, kind: input, shape index: {}]   ;;  %s1515_s3 = inlined_call_operand.vmem [shape: f32[2,1,128], index: 3, kind: output, shape index: {}]  }
   0x1 LB: > { %s868_s13 = sadd.s32 4294967295, %s1248_s12   ;;  %p872_p0 = scmp.ge.s32.totalorder %s1248_s12, 1  ;;  %s1248_s12 = sphi %s1272_s12, %s13_s12  }
   0x2   : > { %p137_p1 = scmp.lt.s32.totalorder %s1248_s12, 3 }
   0x4   : > { %p138_p2 = pnand %p872_p0, %p137_p1 }
   0x5   : > { %p159_p3 = scmp.lt.s32.totalorder (!%p138_p2), %s868_s13, 1 }
   0x6   : > { %141 = sbr.rel (%p138_p2) target bundleno = 311 (0x137), region = 32 }
   0xb   : > { %v1194_v0 = vld [vmem:[%s1513_s1 + $0x78] sm:$0xff]   ;;  %v1250_v1 = vmov 0.0   ;;  %v1196_v3 = vld [vmem:[%s1513_s1 + $0x70] sm:$0xff]   ;;  %vm1251_vm0 = vmmov 0   ;;  %v1198_v5 = vld [vmem:[%s1513_s1 + $0x68] sm:$0xff]   ;;  %s1517_s13 = smov (!%p159_p3, %s868_s13), 1 }
   0xc   : > { %1064 = vmatprep.subr.bf16.mxu0 %v1250_v1  ;;  %1084 = vmatprep.subr.bf16.mxu1 %v1250_v1  ;;  %v1195_v2 = vld [vmem:[%s1513_s1 + $0x38] sm:$0xff]   ;;  %v1197_v4 = vld [vmem:[%s1513_s1 + $0x30] sm:$0xff]   ;;  %v1199_v6 = vld [vmem:[%s1513_s1 + $0x28] sm:$0xff]   ;;  %s1009_s11 = sshll.u32 %s1517_s13, 3  ;;  %s166_s19 = scalar_lea.vmem %s1515_s3, %s1517_s13 }
   0xd   : > { %1065 = vmatpush3.bf16.msra.mxu0 %v1194_v0  ;;  %1080 = vmatprep.mubr.msk.bf16.mxu0 %vm1251_vm0, %v1250_v1  ;;  %v1200_v7 = vld [vmem:[%s1513_s1 + $0x60] sm:$0xff]   ;;  %v1202_v9 = vld [vmem:[%s1513_s1 + $0x58] sm:$0xff]   ;;  %v1204_v11 = vld [vmem:[%s1513_s1 + $0x50] sm:$0xff]   ;;  %s1349_s20 = scalar_lea.vmem %s1512_s0, %s1009_s11 }
   0xe   : > { %1085 = vmatpush3.bf16.msra.mxu1 %v1195_v2  ;;  %1066 = vmatprep.subr.bf16.mxu0 %v1250_v1  ;;  %v1201_v8 = vld [vmem:[%s1513_s1 + $0x20] sm:$0xff]   ;;  %v1203_v10 = vld [vmem:[%s1513_s1 + $0x18] sm:$0xff]   ;;  %v1205_v12 = vld [vmem:[%s1513_s1 + $0x10] sm:$0xff]  }
   0xf   : > { %1086 = vmatprep.subr.bf16.mxu1 %v1250_v1  ;;  %1100 = vmatprep.mubr.msk.bf16.mxu1 %vm1251_vm0, %v1250_v1  ;;  %v1206_v13 = vld [vmem:[%s1513_s1 + $0x48] sm:$0xff]   ;;  %v1208_v15 = vld [vmem:[%s1513_s1 + $0x40] sm:$0xff]   ;;  %v1210_v21 = vld [vmem:[%s1513_s1 + $0xb8] sm:$0xff]  }
  0x10   : > { %v1207_v14 = vld [vmem:[%s1513_s1 + $0x8] sm:$0xff]   ;;  %v1209_v16 = vld [vmem:[%s1513_s1] sm:$0xff]   ;;  %v1211_v22 = vld [vmem:[%s1513_s1 + $0xf8] sm:$0xff]  }
  0x11   : > { %1067 = vmatpush3.bf16.msra.mxu0 %v1196_v3  ;;  %v186_v17 = vld [vmem:[%s1349_s20 + $0x1] sm:$0x1]  ;;  %v168_v18 = vld [vmem:[%s1349_s20] sm:$0x1]  ;;  %v1212_v23 = vld [vmem:[%s1513_s1 + $0xb0] sm:$0xff]  }
  0x12   : > { %1087 = vmatpush3.bf16.msra.mxu1 %v1197_v4  ;;  %1068 = vmatprep.subr.bf16.mxu0 %v1250_v1  ;;  %v187_v19 = vpack.c.bf16 %v186_v17, %v186_v17  ;;  %v169_v20 = vpack.c.bf16 %v168_v18, %v168_v18  ;;  %v1213_v24 = vld [vmem:[%s1513_s1 + $0xf0] sm:$0xff]   ;;  %v1214_v25 = vld [vmem:[%s1513_s1 + $0xa8] sm:$0xff]   ;;  %v1216_v27 = vld [vmem:[%s1513_s1 + $0xa0] sm:$0xff]  }
  0x13   : > { %1088 = vmatprep.subr.bf16.mxu1 %v1250_v1  ;;  %v1215_v26 = vld [vmem:[%s1513_s1 + $0xe8] sm:$0xff]   ;;  %v1217_v28 = vld [vmem:[%s1513_s1 + $0xe0] sm:$0xff]   ;;  %v1218_v29 = vld [vmem:[%s1513_s1 + $0x98] sm:$0xff]  }
  0x14   : > { %v1219_v30 = vld [vmem:[%s1513_s1 + $0xd8] sm:$0xff]   ;;  %v1220_v31 = vld [vmem:[%s1513_s1 + $0x90] sm:$0xff]   ;;  %v1222_v33 = vld [vmem:[%s1513_s1 + $0x88] sm:$0xff]  }
  0x15   : > { %1069 = vmatpush3.bf16.msra.mxu0 %v1198_v5  ;;  %v1221_v32 = vld [vmem:[%s1513_s1 + $0xd0] sm:$0xff]   ;;  %v1223_v34 = vld [vmem:[%s1513_s1 + $0xc8] sm:$0xff]   ;;  %v1224_v35 = vld [vmem:[%s1513_s1 + $0x80] sm:$0xff]  }
  0x16   : > { %1089 = vmatpush3.bf16.msra.mxu1 %v1199_v6  ;;  %1070 = vmatprep.subr.bf16.mxu0 %v1250_v1  ;;  %v907_v36 = vld [vmem:[%s1349_s20 + $0x2] sm:$0x1]  ;;  %v932_v38 = vld [vmem:[%s1349_s20 + $0x3] sm:$0x1]  ;;  %v1226_v41 = vld [vmem:[%s1513_s1 + $0x138] sm:$0xff]  }
  0x17   : > { %1090 = vmatprep.subr.bf16.mxu1 %v1250_v1  ;;  %v1225_v37 = vld [vmem:[%s1513_s1 + $0xc0] sm:$0xff]   ;;  %v383_v39 = vpack.c.bf16 %v907_v36, %v907_v36  ;;  %v491_v40 = vpack.c.bf16 %v932_v38, %v932_v38  ;;  %v1227_v42 = vld [vmem:[%s1513_s1 + $0x178] sm:$0xff]   ;;  %v1228_v43 = vld [vmem:[%s1513_s1 + $0x130] sm:$0xff]  }
  0x18   : > { %v1229_v44 = vld [vmem:[%s1513_s1 + $0x170] sm:$0xff]   ;;  %v1230_v45 = vld [vmem:[%s1513_s1 + $0x128] sm:$0xff]   ;;  %v1232_v47 = vld [vmem:[%s1513_s1 + $0x120] sm:$0xff]  }
  0x19   : > { %1071 = vmatpush3.bf16.msra.mxu0 %v1200_v7  ;;  %v1231_v46 = vld [vmem:[%s1513_s1 + $0x168] sm:$0xff]   ;;  %v1233_v48 = vld [vmem:[%s1513_s1 + $0x160] sm:$0xff]   ;;  %v1234_v49 = vld [vmem:[%s1513_s1 + $0x118] sm:$0xff]  }
  0x1a   : > { %1091 = vmatpush3.bf16.msra.mxu1 %v1201_v8  ;;  %1072 = vmatprep.subr.bf16.mxu0 %v1250_v1  ;;  %v1235_v50 = vld [vmem:[%s1513_s1 + $0x158] sm:$0xff]   ;;  %v1236_v51 = vld [vmem:[%s1513_s1 + $0x110] sm:$0xff]   ;;  %v1238_v53 = vld [vmem:[%s1513_s1 + $0x108] sm:$0xff]  }
  0x1b   : > { %1092 = vmatprep.subr.bf16.mxu1 %v1250_v1  ;;  %v1237_v52 = vld [vmem:[%s1513_s1 + $0x150] sm:$0xff]   ;;  %v1239_v54 = vld [vmem:[%s1513_s1 + $0x148] sm:$0xff]   ;;  %v1240_v55 = vld [vmem:[%s1513_s1 + $0x100] sm:$0xff]  }
  0x1c   : > { %v957_v56 = vld [vmem:[%s1349_s20 + $0x4] sm:$0x1]  ;;  %v982_v58 = vld [vmem:[%s1349_s20 + $0x5] sm:$0x1] }
  0x1d   : > { %1073 = vmatpush3.bf16.msra.mxu0 %v1202_v9  ;;  %v1241_v57 = vld [vmem:[%s1513_s1 + $0x140] sm:$0xff]   ;;  %v600_v59 = vpack.c.bf16 %v957_v56, %v957_v56  ;;  %v708_v60 = vpack.c.bf16 %v982_v58, %v982_v58 }
  0x1e   : > { %1093 = vmatpush3.bf16.msra.mxu1 %v1203_v10  ;;  %1074 = vmatprep.subr.bf16.mxu0 %v1250_v1 }
  0x1f   : > { %1094 = vmatprep.subr.bf16.mxu1 %v1250_v1 }
  0x21   : > { %1075 = vmatpush3.bf16.msra.mxu0 %v1204_v11 }
  0x22   : > { %1095 = vmatpush3.bf16.msra.mxu1 %v1205_v12  ;;  %1076 = vmatprep.subr.bf16.mxu0 %v1250_v1 }
  0x23   : > { %1096 = vmatprep.subr.bf16.mxu1 %v1250_v1 }
  0x25   : > { %1077 = vmatpush3.bf16.msra.mxu0 %v1206_v13 }
  0x26   : > { %1097 = vmatpush3.bf16.msra.mxu1 %v1207_v14  ;;  %1078 = vmatprep.subr.bf16.mxu0 %v1250_v1 }
  0x27   : > { %1098 = vmatprep.subr.bf16.mxu1 %v1250_v1 }
  0x29   : > { %1079 = vmatpush3.bf16.msra.mxu0 %v1208_v15 }
  0x2a   : > { %1099 = vmatpush3.bf16.msra.mxu1 %v1209_v16  ;;  %1104 = vmatprep.subr.bf16.mxu0 %v1250_v1 }
  0x2b   : > { %1124 = vmatprep.subr.bf16.mxu1 %v1250_v1 }
  0x2c   : > { %1081 = vmatmul.mubr.bf16.vlgmr.msra.gmra.mxu0 %v187_v19  ;;  %v815_v19 = vld [vmem:[%s1514_s2] sm:$0x1] }
  0x2d   : > { %1101 = vmatmul.mubr.bf16.vlgmr.msra.gmra.mxu1 %v169_v20  ;;  %1105 = vmatpush3.bf16.msra.mxu0 %v1210_v21 }
  0x2e   : > { %1125 = vmatpush3.bf16.msra.mxu1 %v1211_v22  ;;  %1106 = vmatprep.subr.bf16.mxu0 %v1250_v1 }
  0x2f   : > { %1126 = vmatprep.subr.bf16.mxu1 %v1250_v1  ;;  %1120 = vmatprep.mubr.msk.bf16.mxu0 %vm1251_vm0, %v1250_v1 }
  0x30   : > { %1140 = vmatprep.mubr.msk.bf16.mxu1 %vm1251_vm0, %v1250_v1 }
  0x31   : > { %1107 = vmatpush3.bf16.msra.mxu0 %v1212_v23 }
  0x32   : > { %1127 = vmatpush3.bf16.msra.mxu1 %v1213_v24  ;;  %1108 = vmatprep.subr.bf16.mxu0 %v1250_v1 }
  0x33   : > { %1128 = vmatprep.subr.bf16.mxu1 %v1250_v1 }
  0x35   : > { %1109 = vmatpush3.bf16.msra.mxu0 %v1214_v25 }
  0x36   : > { %1129 = vmatpush3.bf16.msra.mxu1 %v1215_v26  ;;  %1110 = vmatprep.subr.bf16.mxu0 %v1250_v1 }
  0x37   : > { %1130 = vmatprep.subr.bf16.mxu1 %v1250_v1 }
  0x39   : > { %1111 = vmatpush3.bf16.msra.mxu0 %v1216_v27 }
  0x3a   : > { %1131 = vmatpush3.bf16.msra.mxu1 %v1217_v28  ;;  %1112 = vmatprep.subr.bf16.mxu0 %v1250_v1 }
  0x3b   : > { %1132 = vmatprep.subr.bf16.mxu1 %v1250_v1 }
  0x3d   : > { %1113 = vmatpush3.bf16.msra.mxu0 %v1218_v29 }
  0x3e   : > { %1133 = vmatpush3.bf16.msra.mxu1 %v1219_v30  ;;  %1114 = vmatprep.subr.bf16.mxu0 %v1250_v1 }
  0x3f   : > { %1134 = vmatprep.subr.bf16.mxu1 %v1250_v1 }
  0x41   : > { %1115 = vmatpush3.bf16.msra.mxu0 %v1220_v31 }
  0x42   : > { %1135 = vmatpush3.bf16.msra.mxu1 %v1221_v32  ;;  %1116 = vmatprep.subr.bf16.mxu0 %v1250_v1 }
  0x43   : > { %1136 = vmatprep.subr.bf16.mxu1 %v1250_v1 }
  0x45   : > { %1117 = vmatpush3.bf16.msra.mxu0 %v1222_v33 }
  0x46   : > { %1137 = vmatpush3.bf16.msra.mxu1 %v1223_v34  ;;  %1118 = vmatprep.subr.bf16.mxu0 %v1250_v1 }
  0x47   : > { %1138 = vmatprep.subr.bf16.mxu1 %v1250_v1 }
  0x49   : > { %1119 = vmatpush3.bf16.msra.mxu0 %v1224_v35 }
  0x4a   : > { %1139 = vmatpush3.bf16.msra.mxu1 %v1225_v37  ;;  %1144 = vmatprep.subr.bf16.mxu0 %v1250_v1 }
  0x4b   : > { %1164 = vmatprep.subr.bf16.mxu1 %v1250_v1 }
  0x4c   : > { %1121 = vmatmul.mubr.bf16.vlgmr.msra.gmra.mxu0 %v383_v39 }
  0x4d   : > { %1141 = vmatmul.mubr.bf16.vlgmr.msra.gmra.mxu1 %v491_v40  ;;  %1145 = vmatpush3.bf16.msra.mxu0 %v1226_v41 }
  0x4e   : > { %1165 = vmatpush3.bf16.msra.mxu1 %v1227_v42  ;;  %1146 = vmatprep.subr.bf16.mxu0 %v1250_v1 }
  0x4f   : > { %1166 = vmatprep.subr.bf16.mxu1 %v1250_v1  ;;  %1160 = vmatprep.mubr.msk.bf16.mxu0 %vm1251_vm0, %v1250_v1 }
  0x50   : > { %1180 = vmatprep.mubr.msk.bf16.mxu1 %vm1251_vm0, %v1250_v1 }
  0x51   : > { %1147 = vmatpush3.bf16.msra.mxu0 %v1228_v43 }
  0x52   : > { %1167 = vmatpush3.bf16.msra.mxu1 %v1229_v44  ;;  %1148 = vmatprep.subr.bf16.mxu0 %v1250_v1 }
  0x53   : > { %1168 = vmatprep.subr.bf16.mxu1 %v1250_v1 }
  0x55   : > { %1149 = vmatpush3.bf16.msra.mxu0 %v1230_v45 }
  0x56   : > { %1169 = vmatpush3.bf16.msra.mxu1 %v1231_v46  ;;  %1150 = vmatprep.subr.bf16.mxu0 %v1250_v1 }
  0x57   : > { %1170 = vmatprep.subr.bf16.mxu1 %v1250_v1 }
  0x59   : > { %1151 = vmatpush3.bf16.msra.mxu0 %v1232_v47 }
  0x5a   : > { %1171 = vmatpush3.bf16.msra.mxu1 %v1233_v48  ;;  %1152 = vmatprep.subr.bf16.mxu0 %v1250_v1 }
  0x5b   : > { %1172 = vmatprep.subr.bf16.mxu1 %v1250_v1 }
  0x5d   : > { %1153 = vmatpush3.bf16.msra.mxu0 %v1234_v49 }
  0x5e   : > { %1173 = vmatpush3.bf16.msra.mxu1 %v1235_v50  ;;  %1154 = vmatprep.subr.bf16.mxu0 %v1250_v1 }
  0x5f   : > { %1174 = vmatprep.subr.bf16.mxu1 %v1250_v1 }
  0x61   : > { %1155 = vmatpush3.bf16.msra.mxu0 %v1236_v51 }
  0x62   : > { %1175 = vmatpush3.bf16.msra.mxu1 %v1237_v52  ;;  %1156 = vmatprep.subr.bf16.mxu0 %v1250_v1 }
  0x63   : > { %1176 = vmatprep.subr.bf16.mxu1 %v1250_v1 }
  0x65   : > { %1157 = vmatpush3.bf16.msra.mxu0 %v1238_v53 }
  0x66   : > { %1177 = vmatpush3.bf16.msra.mxu1 %v1239_v54  ;;  %1158 = vmatprep.subr.bf16.mxu0 %v1250_v1 }
  0x67   : > { %1178 = vmatprep.subr.bf16.mxu1 %v1250_v1 }
  0x69   : > { %1159 = vmatpush3.bf16.msra.mxu0 %v1240_v55 }
  0x6a   : > { %1179 = vmatpush3.bf16.msra.mxu1 %v1241_v57 }
  0x6c   : > { %1161 = vmatmul.mubr.bf16.vlgmr.msra.gmra.mxu0 %v600_v59 }
  0x6d   : > { %1181 = vmatmul.mubr.bf16.vlgmr.msra.gmra.mxu1 %v708_v60 }
  0xec   : > { %v287_v61 = vpop.f32.mrf.mxu0 }
  0xed   : > { %v375_v62 = vpop.f32.mrf.mxu1 }
  0xee   : > { %v1082_v63 = vpop.f32.mrf.mxu0  ;;  %v376_v13 = vadd.f32 %v375_v62, %v287_v61 }
  0xef   : > { %v1102_v0 = vpop.f32.mrf.mxu1 }
  0xf0   : > { %v290_v2 = vpop.f32.mrf.mxu0 }
  0xf1   : > { %v378_v3 = vpop.f32.mrf.mxu1 }
  0xf2   : > { %v1083_v4 = vpop.f32.mrf.mxu0 }
  0xf3   : > { %v1103_v5 = vpop.f32.mrf.mxu1 }
 0x10c   : > { %v483_v6 = vpop.f32.mrf.mxu0 }
 0x10d   : > { %v591_v7 = vpop.f32.mrf.mxu1  ;;  %v489_v14 = vadd.f32 %v483_v6, %v376_v13 }
 0x10e   : > { %v1122_v8 = vpop.f32.mrf.mxu0 }
 0x10f   : > { %v1142_v9 = vpop.f32.mrf.mxu1  ;;  %v597_v15 = vadd.f32 %v591_v7, %v489_v14 }
 0x110   : > { %v486_v10 = vpop.f32.mrf.mxu0 }
 0x111   : > { %v594_v1 = vpop.f32.mrf.mxu1 }
 0x112   : > { %v1123_v11 = vpop.f32.mrf.mxu0 }
 0x113   : > { %v1143_v12 = vpop.f32.mrf.mxu1 }
 0x12c   : > { %v700_v16 = vpop.f32.mrf.mxu0 }
 0x12d   : > { %v706_v17 = vadd.f32 %v700_v16, %v597_v15  ;;  %v808_v18 = vpop.f32.mrf.mxu1 }
 0x12e   : > { %v1162_v20 = vpop.f32.mrf.mxu0 }
 0x12f   : > { %v814_v21 = vadd.f32 %v808_v18, %v706_v17  ;;  %v1182_v22 = vpop.f32.mrf.mxu1 }
 0x130   : > { %v703_v23 = vpop.f32.mrf.mxu0 }
 0x131   : > { %v816_v24 = vadd.f32 %v815_v19, %v814_v21  ;;  %v811_v25 = vpop.f32.mrf.mxu1 }
 0x132   : > { %v1163_v26 = vpop.f32.mrf.mxu0 }
 0x133   : > { %vm817_vm1 = vcmp.ge.f32.partialorder %v816_v24, 0.0  ;;  %v818_v27 = vmul.f32 0.2, %v816_v24  ;;  %v1183_v28 = vpop.f32.mrf.mxu1 }
 0x135   : > { %v819_v29 = vsel %vm817_vm1, %v816_v24, %v818_v27 }
 0x136   : > { %820 = vst [vmem:[%s166_s19] sm:$0x1] %v819_v29 }
 0x137 PF: > { %s13_s12 = sadd.s32 1, %s1248_s12  }
 0x138   : > { %p10_p4 = scmp.ge.s32.totalorder %s13_s12, 4  }
 0x13a   :  { %12 = sbr.rel (!%p10_p4) target bundleno = 1 (0x1), region = 69 }

</bundles_post_ra>
